<compile_context>
chip_gen: v7x
topology: tpu7x:2x2x1
jax: 0.10.0
libtpu: 0.0.40
codegen_flags: <defaults>
</compile_context>

<pallas_src>
import jax
import jax.numpy as jnp
import numpy as np
from jax.experimental import pallas as pl
from jax.experimental.pallas import tpu as pltpu


# -----------------------------------------------------------------------------
# Kernel A: grid-less prologue -- LSTM stack + 'concat' attention + concat layer
# -----------------------------------------------------------------------------
def prologue_kernel(emb_ref, h0_ref, c0_ref, enc_ref,
                    w_lstm_ref, b_lstm_ref,
                    a_h_ref, a_e_ref, attn_bias_ref,
                    concat_w_ref, concat_b_ref,
                    co_ref, hn_ref, cn_ref):
    num_layers, Bp, Hp = hn_ref.shape

    # ---- multi-layer LSTM cell, single step, PyTorch gate order (i, f, g, o) ----
    x = emb_ref[...]                                           # (Bp, Ep) f32
    for layer in range(num_layers):
        h_prev = h0_ref[layer]                                 # (Bp, Hp) f32
        c_prev = c0_ref[layer]
        xh = jnp.concatenate([x, h_prev], axis=1).astype(jnp.bfloat16)
        gates = (jnp.dot(xh, w_lstm_ref[layer],               # fused [w_ih; w_hh]
                         preferred_element_type=jnp.float32)
                 + b_lstm_ref[layer])                          # (Bp, 4*Hp) f32
        i_g = jax.nn.sigmoid(gates[:, 0 * Hp:1 * Hp])
        f_g = jax.nn.sigmoid(gates[:, 1 * Hp:2 * Hp])
        g_g = jnp.tanh(gates[:, 2 * Hp:3 * Hp])
        o_g = jax.nn.sigmoid(gates[:, 3 * Hp:4 * Hp])
        c_new = f_g * c_prev + i_g * g_g
        h_new = o_g * jnp.tanh(c_new)
        hn_ref[layer] = h_new
        cn_ref[layer] = c_new
        x = h_new                    # inter-layer dropout = identity (eval mode)
    h_top = x                                                  # (Bp, Hp) f32

    # ---- 'concat' attention (no tanh, exactly as the PyTorch module):
    #        score(h, e) = v . (W [h; e] + b) = h.(vW_h) + e.(vW_e) + v.b
    #      a_h / a_e / attn_bias are precomputed in the wrapper (pure param fns).
    enc = enc_ref[...]                                         # (Bp, S, Hp) bf16
    term_h = (jnp.sum(h_top * a_h_ref[...], axis=1, keepdims=True)
              + attn_bias_ref[...])                            # (Bp, 1) f32
    # MXU batched matmul directly on the bf16 enc ref (no f32 copy of enc):
    a_e3 = jnp.broadcast_to(a_e_ref[...][:, None, :], (Bp, 1, Hp))        # bf16
    term_e = jnp.einsum('bqh,bsh->bqs', a_e3, enc,
                        preferred_element_type=jnp.float32)[:, 0, :]      # (Bp, S)
    scores = term_e + term_h                                   # (Bp, S) f32

    mx = jnp.max(scores, axis=1, keepdims=True)
    e = jnp.exp(scores - mx)
    attn = e / jnp.sum(e, axis=1, keepdims=True)               # exact softmax
    attn3 = attn.astype(jnp.bfloat16)[:, None, :]              # (Bp, 1, S)
    context = jnp.einsum('bqs,bsh->bqh', attn3, enc,
                         preferred_element_type=jnp.float32)[:, 0, :]     # (Bp, Hp)

    # ---- concat layer: tanh([context; h_top] @ W + b) (fused single matmul) ----
    ch = jnp.concatenate([context, h_top], axis=1).astype(jnp.bfloat16)   # (Bp, 2Hp)
    pre = (jnp.dot(ch, concat_w_ref[...], preferred_element_type=jnp.float32)
           + concat_b_ref[...])                                # (Bp, Hp) f32
    co_ref[...] = jnp.tanh(pre).astype(jnp.bfloat16)


# -----------------------------------------------------------------------------
# Kernel B: vocab projection, 1-D parallel grid of vocab tiles
#   per-tile outputs: raw logits, tile max, tile sum(exp(logits - max))
# -----------------------------------------------------------------------------
def vocab_proj_kernel(co_ref, out_w_ref, out_b_ref, logits_ref, m_ref, s_ref):
    logits = (jnp.dot(co_ref[...], out_w_ref[0],
                      preferred_element_type=jnp.float32)
              + out_b_ref[0])                                  # (Bp, tile_v) f32
    logits_ref[0] = logits
    t_max = jnp.max(logits, axis=1, keepdims=True)             # (Bp, 1)
    m_ref[0] = t_max
    s_ref[0] = jnp.sum(jnp.exp(logits - t_max), axis=1, keepdims=True)


# -----------------------------------------------------------------------------
# helpers
# -----------------------------------------------------------------------------
def _round_up(x, m):
    return (x + m - 1) // m * m


def _pad_to(x, shape):
    return jnp.pad(x, [(0, t - s) for s, t in zip(x.shape, shape)])


def _nbytes(shape, dtype):
    return int(np.prod(shape)) * np.dtype(dtype).itemsize


def _vmem_capacity_bytes(default=64 << 20):
    # v5e/v6e: 128 MiB, v7x: 64 MiB; fall back to the conservative 64 MiB.
    try:
        return int(pltpu.get_tpu_info().vmem_capacity_bytes)
    except Exception:
        return default


# -----------------------------------------------------------------------------
# Parameter init (deterministic, PyTorch-like fan-in scaling), logical layout
# -----------------------------------------------------------------------------
def init_params(key, vocab_size, embedding_size, hidden_size, num_layers,
                padding_idx, tied=False):
    H, E, V = hidden_size, embedding_size, vocab_size
    assert num_layers == 1 or E == H, "stacked LSTM weight layout requires E == H"
    ks = jax.random.split(key, 8 + 4 * num_layers)

    def unif(k, shape, fan_in):
        bound = 1.0 / np.sqrt(fan_in)
        return jax.random.uniform(k, shape, jnp.float32, -bound, bound)

    emb = jax.random.normal(ks[0], (V, E), jnp.float32) * 0.1
    emb = emb.at[padding_idx].set(0.0)

    w_ih_l, w_hh_l, b_l = [], [], []
    for l in range(num_layers):
        in_dim = E if l == 0 else H
        k0, k1, k2, k3 = ks[8 + 4 * l: 8 + 4 * l + 4]
        w_ih = unif(k0, (4 * H, in_dim), H)
        w_hh = unif(k1, (4 * H, H), H)
        b_ih = unif(k2, (4 * H,), H)
        b_hh = unif(k3, (4 * H,), H)
        w_ih_l.append(w_ih.T)                 # (in, 4H)
        w_hh_l.append(w_hh.T)                 # (H, 4H)
        b_l.append((b_ih + b_hh)[None, :])    # (1, 4H)

    attn_w = unif(ks[1], (H, 2 * H), 2 * H)   # PyTorch (out, in) layout
    attn_b = unif(ks[2], (1, H), 2 * H)
    v = jax.random.normal(ks[3], (1, H), jnp.float32) * 0.1  # uninitialized in torch

    concat_w = unif(ks[4], (H, 2 * H), 2 * H)
    concat_b = unif(ks[5], (1, H), 2 * H)

    out_w = emb if tied else unif(ks[6], (V, H), H)           # (V, H)
    out_b = unif(ks[7], (1, V), H)

    return {
        "embedding": emb,                     # (V, E)
        "w_ih_t": jnp.stack(w_ih_l),          # (L, E|H, 4H)
        "w_hh_t": jnp.stack(w_hh_l),          # (L, H, 4H)
        "b_lstm": jnp.stack(b_l),             # (L, 1, 4H)
        "attn_w": attn_w,                     # (H, 2H)
        "attn_b": attn_b,                     # (1, H)
        "v": v,                               # (1, H)
        "concat_w_t": concat_w.T,             # (2H, H)
        "concat_b": concat_b,                 # (1, H)
        "out_w_t": out_w.T,                   # (H, V)
        "out_b": out_b,                       # (1, V)
    }


# -----------------------------------------------------------------------------
# Wrapper: PyTorch forward semantics
#   input: (1, B) int32; hidden_state: (h0, c0) each (L, B, H);
#   encoder_outputs: (S, B, H)
# Returns (log_probs (B, V), (h_n, c_n))
# -----------------------------------------------------------------------------
def luong_attn_decoder_forward(params, input_ids, hidden_state, encoder_outputs,
                               *, tile_v=2048):
    f32, bf16 = jnp.float32, jnp.bfloat16
    h0, c0 = hidden_state

    ids = input_ids.reshape(-1)                               # (B,)
    # TODO(synk): embedding gather could move in-kernel (PrefetchScalarGridSpec +
    # pl.Element row gather); kept as a JAX-level gather here.
    embedded = params["embedding"][ids]                       # (B, E); dropout = id
    enc_bsh = jnp.transpose(encoder_outputs, (1, 0, 2))       # (B, S, H) batch-major

    B = ids.shape[0]
    L, _, H = h0.shape
    E = embedded.shape[1]
    S = enc_bsh.shape[1]
    V = params["out_b"].shape[-1]

    # padded / tiled geometry: lane = 128; batch padded to 16 for bf16 MXU LHS
    Bp = _round_up(B, 16)
    Hp = _round_up(H, 128)
    Ep = _round_up(E, 128)
    tile_v = _round_up(min(tile_v, _round_up(V, 128)), 128)
    Vp = _round_up(V, tile_v)
    n_tiles = Vp // tile_v

    # ---- activations ----
    emb_p = _pad_to(embedded.astype(f32), (Bp, Ep))
    h0_p = _pad_to(h0.astype(f32), (L, Bp, Hp))
    c0_p = _pad_to(c0.astype(f32), (L, Bp, Hp))
    enc_p = _pad_to(enc_bsh, (Bp, S, Hp)).astype(bf16)

    # ---- parameters: one-time packing (cache across steps in a real decode loop) ----
    in_dim = params["w_ih_t"].shape[1]
    w_ih_p = _pad_to(params["w_ih_t"].reshape(L, in_dim, 4, H),
                     (L, Ep, 4, Hp)).reshape(L, Ep, 4 * Hp)
    w_hh_p = _pad_to(params["w_hh_t"].reshape(L, H, 4, H),
                     (L, Hp, 4, Hp)).reshape(L, Hp, 4 * Hp)
    w_lstm_p = jnp.concatenate([w_ih_p, w_hh_p], axis=1).astype(bf16)  # (L, Ep+Hp, 4Hp)
    b_p = _pad_to(params["b_lstm"].reshape(L, 1, 4, H),
                  (L, 1, 4, Hp)).reshape(L, 1, 4 * Hp).astype(f32)

    # attention precompute (pure function of params; 'concat' score has no tanh):
    a = params["v"] @ params["attn_w"]                        # (1, 2H)
    a_h = _pad_to(a[:, :H], (1, Hp)).astype(f32)
    a_e = _pad_to(a[:, H:], (1, Hp)).astype(bf16)
    attn_bias = jnp.sum(params["v"] * params["attn_b"], axis=1, keepdims=True)  # (1,1)

    cw = params["concat_w_t"]                                 # (2H, H)
    concat_w_p = jnp.concatenate(
        [_pad_to(cw[:H], (Hp, Hp)), _pad_to(cw[H:], (Hp, Hp))], axis=0).astype(bf16)
    concat_b_p = _pad_to(params["concat_b"], (1, Hp)).astype(f32)

    # out_w pre-packed into contiguous per-tile slabs: (n_tiles, Hp, tile_v)
    out_w_p = _pad_to(params["out_w_t"], (Hp, Vp))
    out_w_p = jnp.transpose(out_w_p.reshape(Hp, n_tiles, tile_v), (1, 0, 2)).astype(bf16)
    # padded vocab columns get a very negative bias so they vanish in the softmax
    out_b_p = jnp.pad(params["out_b"].astype(f32), ((0, 0), (0, Vp - V)),
                      constant_values=-1e30).reshape(n_tiles, 1, tile_v)

    vmem_cap = _vmem_capacity_bytes()

    # ---------------- call A: prologue (grid-less => single-buffered inputs) --------
    a_bytes = sum(_nbytes(x.shape, x.dtype) for x in
                  (emb_p, h0_p, c0_p, enc_p, w_lstm_p, b_p, a_h, a_e, attn_bias,
                   concat_w_p, concat_b_p))
    a_bytes += _nbytes((Bp, Hp), bf16) + 2 * _nbytes((L, Bp, Hp), f32)
    vmem_a = int(min(max(2 * a_bytes + (2 << 20), 16 << 20), vmem_cap - (4 << 20)))

    co, h_n, c_n = pl.pallas_call(
        prologue_kernel,
        out_shape=(jax.ShapeDtypeStruct((Bp, Hp), bf16),
                   jax.ShapeDtypeStruct((L, Bp, Hp), f32),
                   jax.ShapeDtypeStruct((L, Bp, Hp), f32)),
        compiler_params=pltpu.CompilerParams(vmem_limit_bytes=vmem_a),
    )(emb_p, h0_p, c0_p, enc_p, w_lstm_p, b_p, a_h, a_e, attn_bias,
      concat_w_p, concat_b_p)

    # ---------------- call B: vocab projection (parallel vocab tiles) ---------------
    need_b = 2 * (_nbytes((Hp, tile_v), bf16) + _nbytes((1, tile_v), f32)
                  + _nbytes((Bp, tile_v), f32) + _nbytes((Bp, Hp), bf16)
                  + 2 * _nbytes((Bp, 1), f32)) + (2 << 20)
    vmem_b = int(min(max(need_b, 16 << 20), vmem_cap - (4 << 20)))

    flops = 2 * Bp * Hp * Vp
    bytes_accessed = (_nbytes((n_tiles, Hp, tile_v), bf16)      # out_w stream
                      + _nbytes((n_tiles, Bp, tile_v), f32)     # logits writeback
                      + _nbytes((Bp, Hp), bf16)
                      + _nbytes((n_tiles, 1, tile_v), f32))

    grid_spec = pltpu.PrefetchScalarGridSpec(
        num_scalar_prefetch=0,
        grid=(n_tiles,),
        in_specs=[
            # co is a tiny constant block; after the prologue split, default
            # double-buffering of it costs nothing (all big once-used operands
            # were moved to the grid-less call A).
            pl.BlockSpec((Bp, Hp), lambda j: (0, 0)),            # tanh(concat), bf16
            pl.BlockSpec((1, Hp, tile_v), lambda j: (j, 0, 0)),  # out_w slab (bf16)
            pl.BlockSpec((1, 1, tile_v), lambda j: (j, 0, 0)),   # out_b slab (f32)
        ],
        out_specs=[
            pl.BlockSpec((1, Bp, tile_v), lambda j: (j, 0, 0)),  # raw logits tile
            pl.BlockSpec((1, Bp, 1), lambda j: (j, 0, 0)),       # per-tile max
            pl.BlockSpec((1, Bp, 1), lambda j: (j, 0, 0)),       # per-tile sumexp
        ],
    )

    logits_tiles, m_tiles, s_tiles = pl.pallas_call(
        vocab_proj_kernel,
        out_shape=(jax.ShapeDtypeStruct((n_tiles, Bp, tile_v), f32),
                   jax.ShapeDtypeStruct((n_tiles, Bp, 1), f32),
                   jax.ShapeDtypeStruct((n_tiles, Bp, 1), f32)),
        grid_spec=grid_spec,
        compiler_params=pltpu.CompilerParams(
            dimension_semantics=("parallel",),   # no cross-tile state -> 2 TCs on v7x
            vmem_limit_bytes=vmem_b),
        cost_estimate=pl.CostEstimate(flops=int(flops),
                                      transcendentals=int(Bp * Vp),
                                      bytes_accessed=int(bytes_accessed)),
    )(co, out_w_p, out_b_p)

    # ---- wrapper-side logsumexp reduction + normalization (tiny vs out_w stream) ----
    m = m_tiles[:, :, 0]                                       # (n_tiles, Bp)
    s = s_tiles[:, :, 0]
    m_glob = jnp.max(m, axis=0)                                # (Bp,)
    lse = m_glob + jnp.log(jnp.sum(s * jnp.exp(m - m_glob[None, :]), axis=0))
    logp = logits_tiles - lse[None, :, None]                   # (n_tiles, Bp, tile_v)
    logp = jnp.transpose(logp, (1, 0, 2)).reshape(Bp, Vp)[:B, :V]

    h_n = h_n[:, :B, :H]
    c_n = c_n[:, :B, :H]
    return logp, (h_n, c_n)


# -----------------------------------------------------------------------------
# Pure-JAX reference (same math, same bf16 rounding of matmul operands)
# -----------------------------------------------------------------------------
def reference_forward(params, input_ids, hidden_state, encoder_outputs):
    f32, bf16 = jnp.float32, jnp.bfloat16
    h0, c0 = hidden_state
    ids = input_ids.reshape(-1)
    x = params["embedding"][ids]
    L, _, H = h0.shape
    hs, cs = [], []
    for l in range(L):
        w_ih = params["w_ih_t"][l].astype(bf16)
        w_hh = params["w_hh_t"][l].astype(bf16)
        gates = (jnp.dot(x.astype(bf16), w_ih, preferred_element_type=f32)
                 + jnp.dot(h0[l].astype(bf16), w_hh, preferred_element_type=f32)
                 + params["b_lstm"][l])
        i = jax.nn.sigmoid(gates[:, :H]); f = jax.nn.sigmoid(gates[:, H:2 * H])
        g = jnp.tanh(gates[:, 2 * H:3 * H]); o = jax.nn.sigmoid(gates[:, 3 * H:])
        c = f * c0[l] + i * g
        h = o * jnp.tanh(c)
        hs.append(h); cs.append(c); x = h
    h_top = x
    enc = jnp.transpose(encoder_outputs, (1, 0, 2)).astype(bf16).astype(f32)  # (B,S,H)
    hid_b = jnp.broadcast_to(h_top[:, None, :], enc.shape)
    cat = jnp.concatenate([hid_b, enc], axis=-1)                              # (B,S,2H)
    proj = cat @ params["attn_w"].T + params["attn_b"][0]                     # (B,S,H)
    scores = jnp.sum(proj * params["v"][0], axis=-1)                          # (B,S)
    attn = jax.nn.softmax(scores, axis=1)
    context = jnp.einsum("bs,bsh->bh", attn.astype(bf16), enc.astype(bf16),
                         preferred_element_type=f32)
    cw = params["concat_w_t"].astype(bf16)                                    # (2H, H)
    pre = (jnp.dot(context.astype(bf16), cw[:H], preferred_element_type=f32)
           + jnp.dot(h_top.astype(bf16), cw[H:], preferred_element_type=f32)
           + params["concat_b"])
    co = jnp.tanh(pre)
    logits = (jnp.dot(co.astype(bf16), params["out_w_t"].astype(bf16),
                      preferred_element_type=f32)
              + params["out_b"])
    logp = jax.nn.log_softmax(logits, axis=1)
    return logp, (jnp.stack(hs), jnp.stack(cs))


if __name__ == "__main__":
    vocab_size, embedding_size, hidden_size = 1000, 32, 32
    num_layers, batch, max_len = 2, 2, 8
    padding_idx = 0

    key = jax.random.PRNGKey(0)
    k_param, k_in, k_h, k_c, k_enc = jax.random.split(key, 5)
    params = init_params(k_param, vocab_size, embedding_size, hidden_size,
                         num_layers, padding_idx, tied=False)

    input_ids = jax.random.randint(k_in, (1, batch), 1, vocab_size, dtype=jnp.int32)
    h0 = jax.random.normal(k_h, (num_layers, batch, hidden_size), jnp.float32)
    c0 = jax.random.normal(k_c, (num_layers, batch, hidden_size), jnp.float32)
    encoder_outputs = jax.random.normal(k_enc, (max_len, batch, hidden_size), jnp.float32)

    # tile_v=256 -> 4 vocab tiles: exercises the parallel grid, the per-tile
    # logsumexp partials + wrapper reduction, and the vocab padding path.
    logp, (h_n, c_n) = luong_attn_decoder_forward(
        params, input_ids, (h0, c0), encoder_outputs, tile_v=256)
    jax.block_until_ready((logp, h_n, c_n))

    ref_logp, (ref_h, ref_c) = reference_forward(params, input_ids, (h0, c0),
                                                 encoder_outputs)
    np.testing.assert_allclose(np.asarray(h_n), np.asarray(ref_h), rtol=2e-3, atol=2e-3)
    np.testing.assert_allclose(np.asarray(c_n), np.asarray(ref_c), rtol=2e-3, atol=2e-3)
    # tolerance covers bf16 rounding of MXU operands (attn weights, a_e, weights).
    np.testing.assert_allclose(np.asarray(logp), np.asarray(ref_logp),
                               rtol=1e-2, atol=1e-2)
    assert logp.shape == (batch, vocab_size)
    assert h_n.shape == (num_layers, batch, hidden_size)

    print("KERNEL_OK")
</pallas_src>

<mosaic_0001>
module attributes {stable_mosaic.version = 11 : i64} {
  func.func @prologue_kernel(%arg0: memref<16x128xf32, #tpu.memory_space<vmem>>, %arg1: memref<2x16x128xf32, #tpu.memory_space<vmem>>, %arg2: memref<2x16x128xf32, #tpu.memory_space<vmem>>, %arg3: memref<16x8x128xbf16, #tpu.memory_space<vmem>>, %arg4: memref<2x256x512xbf16, #tpu.memory_space<vmem>>, %arg5: memref<2x1x512xf32, #tpu.memory_space<vmem>>, %arg6: memref<1x128xf32, #tpu.memory_space<vmem>>, %arg7: memref<1x128xbf16, #tpu.memory_space<vmem>>, %arg8: memref<1x1xf32, #tpu.memory_space<vmem>>, %arg9: memref<256x128xbf16, #tpu.memory_space<vmem>>, %arg10: memref<1x128xf32, #tpu.memory_space<vmem>>, %arg11: memref<16x128xbf16, #tpu.memory_space<vmem>>, %arg12: memref<2x16x128xf32, #tpu.memory_space<vmem>>, %arg13: memref<2x16x128xf32, #tpu.memory_space<vmem>>) attributes {dimension_semantics = [], scalar_prefetch = 0 : i64, scratch_operands = 0 : i64, tpu.core_type = #tpu.core_type<tc>} {
    %c0 = arith.constant 0 : index
    %c0_0 = arith.constant 0 : index
    %0 = vector.load %arg0[%c0, %c0_0] : memref<16x128xf32, #tpu.memory_space<vmem>>, vector<16x128xf32>
    %c0_1 = arith.constant 0 : index
    %c0_2 = arith.constant 0 : index
    %c0_3 = arith.constant 0 : index
    %1 = vector.load %arg1[%c0_1, %c0_2, %c0_3] : memref<2x16x128xf32, #tpu.memory_space<vmem>>, vector<1x16x128xf32>
    %2 = vector.shape_cast %1 : vector<1x16x128xf32> to vector<16x128xf32>
    %c0_4 = arith.constant 0 : index
    %c0_5 = arith.constant 0 : index
    %c0_6 = arith.constant 0 : index
    %3 = vector.load %arg2[%c0_4, %c0_5, %c0_6] : memref<2x16x128xf32, #tpu.memory_space<vmem>>, vector<1x16x128xf32>
    %4 = vector.shape_cast %3 : vector<1x16x128xf32> to vector<16x128xf32>
    %5 = tpu.concatenate %0, %2 in 1 : vector<16x128xf32>, vector<16x128xf32> -> vector<16x256xf32>
    %6 = arith.truncf %5 : vector<16x256xf32> to vector<16x256xbf16>
    %c0_7 = arith.constant 0 : index
    %c0_8 = arith.constant 0 : index
    %c0_9 = arith.constant 0 : index
    %7 = vector.load %arg4[%c0_7, %c0_8, %c0_9] : memref<2x256x512xbf16, #tpu.memory_space<vmem>>, vector<1x256x512xbf16>
    %8 = vector.shape_cast %7 : vector<1x256x512xbf16> to vector<256x512xbf16>
    %cst = arith.constant dense<0.000000e+00> : vector<16x512xf32>
    %9 = tpu.matmul %6, %8, %cst {dimension_numbers = #tpu.dot_dimension_numbers<[1], [0], [0], [1], [0, 0, 1, 1], [], []>} : vector<16x256xbf16>, vector<256x512xbf16>, vector<16x512xf32> -> vector<16x512xf32>
    %c0_10 = arith.constant 0 : index
    %c0_11 = arith.constant 0 : index
    %c0_12 = arith.constant 0 : index
    %10 = vector.load %arg5[%c0_10, %c0_11, %c0_12] : memref<2x1x512xf32, #tpu.memory_space<vmem>>, vector<1x1x512xf32>
    %11 = vector.shape_cast %10 : vector<1x1x512xf32> to vector<1x512xf32>
    %12 = vector.broadcast %11 : vector<1x512xf32> to vector<16x512xf32>
    %13 = arith.addf %9, %12 : vector<16x512xf32>
    %14 = vector.extract_strided_slice %13 {offsets = [0, 0], sizes = [16, 128], strides = [1, 1]} : vector<16x512xf32> to vector<16x128xf32>
    %15 = arith.negf %14 : vector<16x128xf32>
    %16 = math.exp %15 : vector<16x128xf32>
    %cst_13 = arith.constant 1.000000e+00 : f32
    %17 = vector.broadcast %cst_13 : f32 to vector<16x128xf32>
    %18 = arith.addf %17, %16 : vector<16x128xf32>
    %19 = arith.divf %17, %18 : vector<16x128xf32>
    %20 = vector.extract_strided_slice %13 {offsets = [0, 128], sizes = [16, 128], strides = [1, 1]} : vector<16x512xf32> to vector<16x128xf32>
    %21 = arith.negf %20 : vector<16x128xf32>
    %22 = math.exp %21 : vector<16x128xf32>
    %cst_14 = arith.constant 1.000000e+00 : f32
    %23 = vector.broadcast %cst_14 : f32 to vector<16x128xf32>
    %24 = arith.addf %23, %22 : vector<16x128xf32>
    %25 = arith.divf %23, %24 : vector<16x128xf32>
    %26 = vector.extract_strided_slice %13 {offsets = [0, 256], sizes = [16, 128], strides = [1, 1]} : vector<16x512xf32> to vector<16x128xf32>
    %27 = math.tanh %26 : vector<16x128xf32>
    %28 = vector.extract_strided_slice %13 {offsets = [0, 384], sizes = [16, 128], strides = [1, 1]} : vector<16x512xf32> to vector<16x128xf32>
    %29 = arith.negf %28 : vector<16x128xf32>
    %30 = math.exp %29 : vector<16x128xf32>
    %cst_15 = arith.constant 1.000000e+00 : f32
    %31 = vector.broadcast %cst_15 : f32 to vector<16x128xf32>
    %32 = arith.addf %31, %30 : vector<16x128xf32>
    %33 = arith.divf %31, %32 : vector<16x128xf32>
    %34 = arith.mulf %25, %4 : vector<16x128xf32>
    %35 = arith.mulf %19, %27 : vector<16x128xf32>
    %36 = arith.addf %34, %35 : vector<16x128xf32>
    %37 = math.tanh %36 : vector<16x128xf32>
    %38 = arith.mulf %33, %37 : vector<16x128xf32>
    %c0_16 = arith.constant 0 : index
    %c0_17 = arith.constant 0 : index
    %c0_18 = arith.constant 0 : index
    %39 = vector.load %arg12[%c0_16, %c0_17, %c0_18] : memref<2x16x128xf32, #tpu.memory_space<vmem>>, vector<1x16x128xf32>
    %40 = vector.shape_cast %39 : vector<1x16x128xf32> to vector<16x128xf32>
    %41 = vector.shape_cast %38 : vector<16x128xf32> to vector<1x16x128xf32>
    tpu.vector_store %arg12[%c0_16, %c0_17, %c0_18], %41 {strides = array<i32>} : memref<2x16x128xf32, #tpu.memory_space<vmem>>, vector<1x16x128xf32>,
    %c0_19 = arith.constant 0 : index
    %c0_20 = arith.constant 0 : index
    %c0_21 = arith.constant 0 : index
    %42 = vector.load %arg13[%c0_19, %c0_20, %c0_21] : memref<2x16x128xf32, #tpu.memory_space<vmem>>, vector<1x16x128xf32>
    %43 = vector.shape_cast %42 : vector<1x16x128xf32> to vector<16x128xf32>
    %44 = vector.shape_cast %36 : vector<16x128xf32> to vector<1x16x128xf32>
    tpu.vector_store %arg13[%c0_19, %c0_20, %c0_21], %44 {strides = array<i32>} : memref<2x16x128xf32, #tpu.memory_space<vmem>>, vector<1x16x128xf32>,
    %c1 = arith.constant 1 : index
    %c0_22 = arith.constant 0 : index
    %c0_23 = arith.constant 0 : index
    %45 = vector.load %arg1[%c1, %c0_22, %c0_23] : memref<2x16x128xf32, #tpu.memory_space<vmem>>, vector<1x16x128xf32>
    %46 = vector.shape_cast %45 : vector<1x16x128xf32> to vector<16x128xf32>
    %c1_24 = arith.constant 1 : index
    %c0_25 = arith.constant 0 : index
    %c0_26 = arith.constant 0 : index
    %47 = vector.load %arg2[%c1_24, %c0_25, %c0_26] : memref<2x16x128xf32, #tpu.memory_space<vmem>>, vector<1x16x128xf32>
    %48 = vector.shape_cast %47 : vector<1x16x128xf32> to vector<16x128xf32>
    %49 = tpu.concatenate %38, %46 in 1 : vector<16x128xf32>, vector<16x128xf32> -> vector<16x256xf32>
    %50 = arith.truncf %49 : vector<16x256xf32> to vector<16x256xbf16>
    %c1_27 = arith.constant 1 : index
    %c0_28 = arith.constant 0 : index
    %c0_29 = arith.constant 0 : index
    %51 = vector.load %arg4[%c1_27, %c0_28, %c0_29] : memref<2x256x512xbf16, #tpu.memory_space<vmem>>, vector<1x256x512xbf16>
    %52 = vector.shape_cast %51 : vector<1x256x512xbf16> to vector<256x512xbf16>
    %cst_30 = arith.constant dense<0.000000e+00> : vector<16x512xf32>
    %53 = tpu.matmul %50, %52, %cst_30 {dimension_numbers = #tpu.dot_dimension_numbers<[1], [0], [0], [1], [0, 0, 1, 1], [], []>} : vector<16x256xbf16>, vector<256x512xbf16>, vector<16x512xf32> -> vector<16x512xf32>
    %c1_31 = arith.constant 1 : index
    %c0_32 = arith.constant 0 : index
    %c0_33 = arith.constant 0 : index
    %54 = vector.load %arg5[%c1_31, %c0_32, %c0_33] : memref<2x1x512xf32, #tpu.memory_space<vmem>>, vector<1x1x512xf32>
    %55 = vector.shape_cast %54 : vector<1x1x512xf32> to vector<1x512xf32>
    %56 = vector.broadcast %55 : vector<1x512xf32> to vector<16x512xf32>
    %57 = arith.addf %53, %56 : vector<16x512xf32>
    %58 = vector.extract_strided_slice %57 {offsets = [0, 0], sizes = [16, 128], strides = [1, 1]} : vector<16x512xf32> to vector<16x128xf32>
    %59 = arith.negf %58 : vector<16x128xf32>
    %60 = math.exp %59 : vector<16x128xf32>
    %cst_34 = arith.constant 1.000000e+00 : f32
    %61 = vector.broadcast %cst_34 : f32 to vector<16x128xf32>
    %62 = arith.addf %61, %60 : vector<16x128xf32>
    %63 = arith.divf %61, %62 : vector<16x128xf32>
    %64 = vector.extract_strided_slice %57 {offsets = [0, 128], sizes = [16, 128], strides = [1, 1]} : vector<16x512xf32> to vector<16x128xf32>
    %65 = arith.negf %64 : vector<16x128xf32>
    %66 = math.exp %65 : vector<16x128xf32>
    %cst_35 = arith.constant 1.000000e+00 : f32
    %67 = vector.broadcast %cst_35 : f32 to vector<16x128xf32>
    %68 = arith.addf %67, %66 : vector<16x128xf32>
    %69 = arith.divf %67, %68 : vector<16x128xf32>
    %70 = vector.extract_strided_slice %57 {offsets = [0, 256], sizes = [16, 128], strides = [1, 1]} : vector<16x512xf32> to vector<16x128xf32>
    %71 = math.tanh %70 : vector<16x128xf32>
    %72 = vector.extract_strided_slice %57 {offsets = [0, 384], sizes = [16, 128], strides = [1, 1]} : vector<16x512xf32> to vector<16x128xf32>
    %73 = arith.negf %72 : vector<16x128xf32>
    %74 = math.exp %73 : vector<16x128xf32>
    %cst_36 = arith.constant 1.000000e+00 : f32
    %75 = vector.broadcast %cst_36 : f32 to vector<16x128xf32>
    %76 = arith.addf %75, %74 : vector<16x128xf32>
    %77 = arith.divf %75, %76 : vector<16x128xf32>
    %78 = arith.mulf %69, %48 : vector<16x128xf32>
    %79 = arith.mulf %63, %71 : vector<16x128xf32>
    %80 = arith.addf %78, %79 : vector<16x128xf32>
    %81 = math.tanh %80 : vector<16x128xf32>
    %82 = arith.mulf %77, %81 : vector<16x128xf32>
    %c1_37 = arith.constant 1 : index
    %c0_38 = arith.constant 0 : index
    %c0_39 = arith.constant 0 : index
    %83 = vector.load %arg12[%c1_37, %c0_38, %c0_39] : memref<2x16x128xf32, #tpu.memory_space<vmem>>, vector<1x16x128xf32>
    %84 = vector.shape_cast %83 : vector<1x16x128xf32> to vector<16x128xf32>
    %85 = vector.shape_cast %82 : vector<16x128xf32> to vector<1x16x128xf32>
    tpu.vector_store %arg12[%c1_37, %c0_38, %c0_39], %85 {strides = array<i32>} : memref<2x16x128xf32, #tpu.memory_space<vmem>>, vector<1x16x128xf32>,
    %c1_40 = arith.constant 1 : index
    %c0_41 = arith.constant 0 : index
    %c0_42 = arith.constant 0 : index
    %86 = vector.load %arg13[%c1_40, %c0_41, %c0_42] : memref<2x16x128xf32, #tpu.memory_space<vmem>>, vector<1x16x128xf32>
    %87 = vector.shape_cast %86 : vector<1x16x128xf32> to vector<16x128xf32>
    %88 = vector.shape_cast %80 : vector<16x128xf32> to vector<1x16x128xf32>
    tpu.vector_store %arg13[%c1_40, %c0_41, %c0_42], %88 {strides = array<i32>} : memref<2x16x128xf32, #tpu.memory_space<vmem>>, vector<1x16x128xf32>,
    %c0_43 = arith.constant 0 : index
    %c0_44 = arith.constant 0 : index
    %c0_45 = arith.constant 0 : index
    %89 = vector.load %arg3[%c0_43, %c0_44, %c0_45] : memref<16x8x128xbf16, #tpu.memory_space<vmem>>, vector<16x8x128xbf16>
    %c0_46 = arith.constant 0 : index
    %c0_47 = arith.constant 0 : index
    %90 = vector.load %arg6[%c0_46, %c0_47] : memref<1x128xf32, #tpu.memory_space<vmem>>, vector<1x128xf32>
    %91 = vector.broadcast %90 : vector<1x128xf32> to vector<16x128xf32>
    %92 = arith.mulf %82, %91 : vector<16x128xf32>
    %cst_48 = arith.constant dense<0.000000e+00> : vector<16xf32>
    %93 = vector.multi_reduction <add>, %92, %cst_48 [1] : vector<16x128xf32> to vector<16xf32>
    %94 = vector.shape_cast %93 : vector<16xf32> to vector<16x1xf32>
    %c0_49 = arith.constant 0 : index
    %c0_50 = arith.constant 0 : index
    %95 = vector.load %arg8[%c0_49, %c0_50] : memref<1x1xf32, #tpu.memory_space<vmem>>, vector<1x1xf32>
    %96 = vector.broadcast %95 : vector<1x1xf32> to vector<16x1xf32>
    %97 = arith.addf %94, %96 : vector<16x1xf32>
    %c0_51 = arith.constant 0 : index
    %c0_52 = arith.constant 0 : index
    %98 = vector.load %arg7[%c0_51, %c0_52] : memref<1x128xbf16, #tpu.memory_space<vmem>>, vector<1x128xbf16>
    %99 = vector.shape_cast %98 : vector<1x128xbf16> to vector<1x1x128xbf16>
    %100 = vector.shape_cast %99 : vector<1x1x128xbf16> to vector<1x1x128xbf16>
    %101 = vector.broadcast %100 : vector<1x1x128xbf16> to vector<16x1x128xbf16>
    "tpu.trace_start"() <{level = 10 : i32, message = "bqh,bsh->bqs"}> : () -> ()
    %cst_53 = arith.constant dense<0.000000e+00> : vector<16x1x8xf32>
    %102 = tpu.matmul %101, %89, %cst_53 {dimension_numbers = #tpu.dot_dimension_numbers<[2], [2], [1], [1], [0, 0, 0, 1, 1, 1], [0], [0]>} : vector<16x1x128xbf16>, vector<16x8x128xbf16>, vector<16x1x8xf32> -> vector<16x1x8xf32>
    "tpu.trace_stop"() : () -> ()
    %103 = vector.shape_cast %102 : vector<16x1x8xf32> to vector<16x8xf32>
    %104 = vector.broadcast %97 : vector<16x1xf32> to vector<16x8xf32>
    %105 = arith.addf %103, %104 : vector<16x8xf32>
    %cst_54 = arith.constant dense<0xFF800000> : vector<16xf32>
    %106 = vector.multi_reduction <maximumf>, %105, %cst_54 [1] : vector<16x8xf32> to vector<16xf32>
    %107 = vector.shape_cast %106 : vector<16xf32> to vector<16x1xf32>
    %108 = vector.broadcast %107 : vector<16x1xf32> to vector<16x8xf32>
    %109 = arith.subf %105, %108 : vector<16x8xf32>
    %110 = math.exp %109 : vector<16x8xf32>
    %cst_55 = arith.constant dense<0.000000e+00> : vector<16xf32>
    %111 = vector.multi_reduction <add>, %110, %cst_55 [1] : vector<16x8xf32> to vector<16xf32>
    %112 = vector.shape_cast %111 : vector<16xf32> to vector<16x1xf32>
    %113 = vector.broadcast %112 : vector<16x1xf32> to vector<16x8xf32>
    %114 = arith.divf %110, %113 : vector<16x8xf32>
    %115 = arith.truncf %114 : vector<16x8xf32> to vector<16x8xbf16>
    %116 = vector.shape_cast %115 : vector<16x8xbf16> to vector<16x1x8xbf16>
    "tpu.trace_start"() <{level = 10 : i32, message = "bqs,bsh->bqh"}> : () -> ()
    %cst_56 = arith.constant dense<0.000000e+00> : vector<16x1x128xf32>
    %117 = tpu.matmul %116, %89, %cst_56 {dimension_numbers = #tpu.dot_dimension_numbers<[2], [1], [1], [2], [0, 0, 0, 1, 1, 2], [0], [0]>} : vector<16x1x8xbf16>, vector<16x8x128xbf16>, vector<16x1x128xf32> -> vector<16x1x128xf32>
    "tpu.trace_stop"() : () -> ()
    %118 = vector.shape_cast %117 : vector<16x1x128xf32> to vector<16x128xf32>
    %119 = tpu.concatenate %118, %82 in 1 : vector<16x128xf32>, vector<16x128xf32> -> vector<16x256xf32>
    %120 = arith.truncf %119 : vector<16x256xf32> to vector<16x256xbf16>
    %c0_57 = arith.constant 0 : index
    %c0_58 = arith.constant 0 : index
    %121 = vector.load %arg9[%c0_57, %c0_58] : memref<256x128xbf16, #tpu.memory_space<vmem>>, vector<256x128xbf16>
    %cst_59 = arith.constant dense<0.000000e+00> : vector<16x128xf32>
    %122 = tpu.matmul %120, %121, %cst_59 {dimension_numbers = #tpu.dot_dimension_numbers<[1], [0], [0], [1], [0, 0, 1, 1], [], []>} : vector<16x256xbf16>, vector<256x128xbf16>, vector<16x128xf32> -> vector<16x128xf32>
    %c0_60 = arith.constant 0 : index
    %c0_61 = arith.constant 0 : index
    %123 = vector.load %arg10[%c0_60, %c0_61] : memref<1x128xf32, #tpu.memory_space<vmem>>, vector<1x128xf32>
    %124 = vector.broadcast %123 : vector<1x128xf32> to vector<16x128xf32>
    %125 = arith.addf %122, %124 : vector<16x128xf32>
    %126 = math.tanh %125 : vector<16x128xf32>
    %127 = arith.truncf %126 : vector<16x128xf32> to vector<16x128xbf16>
    %c0_62 = arith.constant 0 : index
    %c0_63 = arith.constant 0 : index
    %128 = vector.load %arg11[%c0_62, %c0_63] : memref<16x128xbf16, #tpu.memory_space<vmem>>, vector<16x128xbf16>
    tpu.vector_store %arg11[%c0_62, %c0_63], %127 {strides = array<i32>} : memref<16x128xbf16, #tpu.memory_space<vmem>>, vector<16x128xbf16>,
    return
  }
}

</mosaic_0001>

<bundles_post_ra>
// kernel: tpu_custom_call.1
= control target key start
LH: loop header
LB: loop body
LE: loop exit
PB: predicated region body
PF: predicated region fallthrough
CT: control target
= control target key end

     0   :  { %s4998_s0 = inlined_call_operand.hbm [shape: f32[16,128], index: 0, kind: input, shape index: {}]   ;;  %s4999_s1 = inlined_call_operand.hbm [shape: f32[2,16,128], index: 1, kind: input, shape index: {}]   ;;  %s5000_s2 = inlined_call_operand.hbm [shape: f32[2,16,128], index: 2, kind: input, shape index: {}]   ;;  %s5001_s3 = inlined_call_operand.hbm [shape: bf16[16,8,128], index: 3, kind: input, shape index: {}]   ;;  %s5002_s4 = inlined_call_operand.hbm [shape: bf16[2,256,512], index: 4, kind: input, shape index: {}]   ;;  %s5003_s5 = inlined_call_operand.vmem [shape: f32[2,1,512], index: 5, kind: input, shape index: {}]   ;;  %s5004_s6 = inlined_call_operand.vmem [shape: f32[1,128], index: 6, kind: input, shape index: {}]   ;;  %s5005_s7 = inlined_call_operand.vmem [shape: bf16[1,128], index: 7, kind: input, shape index: {}]   ;;  %s5006_s8 = inlined_call_operand.<no memory space> [shape: f32[1,1], index: 8, kind: input, shape index: {}]   ;;  %s5007_s9 = inlined_call_operand.hbm [shape: bf16[256,128], index: 9, kind: input, shape index: {}]   ;;  %s5008_s10 = inlined_call_operand.vmem [shape: f32[1,128], index: 10, kind: input, shape index: {}]   ;;  %s5009_s11 = inlined_call_operand.hbm [shape: bf16[16,128], index: 11, kind: output, shape index: {0}]   ;;  %s5010_s12 = inlined_call_operand.hbm [shape: f32[2,16,128], index: 12, kind: output, shape index: {1}]   ;;  %s5011_s13 = inlined_call_operand.hbm [shape: f32[2,16,128], index: 13, kind: output, shape index: {2}]  }
   0x1   :  { %v19_v0 = vstv %s5006_s8 }
   0x2   :  { %20 = vst [vmem:[#allocation2] sm:$0x1] %v19_v0 }
   0x3   :  { %21 = vsyncpa [#allocation4], 0 }
   0x4   :  { %22 = vsyncpa [#allocation7], 0 }
   0x5   :  { %23 = vsyncpa [#allocation10], 0 }
   0x6   :  { %24 = vsyncpa [#allocation13], 0 }
   0x7   :  { %25 = vsyncpa [#allocation5], 0 }
   0x8   :  { %26 = vsyncpa [#allocation16], 0  ;;  %s4298_s27 = smov [#allocation6]   ;;  %s4299_s29 = smov [#allocation9]  }
   0x9   :  { %s44_s28 = sshll.u32 %s4298_s27, 4  ;;  %s68_s30 = sshll.u32 %s4299_s29, 4  ;;  %s45_s28 = int_to_ptr.vmem [resolvable:$true] %s44_s28  ;;  %s4389_s30 = int_to_ptr.vmem [resolvable:$true] %s68_s30 }
   0xa   :  { %s4088_s16 = scalar_lea.hbm %s4999_s1, 512 }
   0xb   :  { %p4089_p0 = scmp.ne.s32.totalorder %s4999_s1, %s4088_s16  ;;  %p4092_p1 = scmp.lt.u32.totalorder %s4088_s16, %s4999_s1 }
   0xd   :  { %p4094_p2 = pnand %p4092_p1, %p4089_p0 }
   0xf   :  { %4097 = shalt.err (!%p4094_p2)
}
  0x10   :  { %s4098_s20 = scalar_lea.vmem %s45_s28, 512  ;;  %p4103_p4 = scmp.lt.s32.totalorder %s45_s28, %s45_s28 }
  0x11   :  { %p4099_p3 = scmp.ne.s32.totalorder %s45_s28, %s4098_s20  ;;  %p4104_p5 = scmp.lt.s32.totalorder %s4098_s20, %s4098_s20 }
  0x13   :  { %p4105_p6 = por %p4104_p5, %p4103_p4 }
  0x15   :  { %p4106_p7 = pnand %p4105_p6, %p4099_p3 }
  0x17   :  { %4109 = shalt.err (!%p4106_p7)
}
  0x18   :  { %s4300_s21 = smov 128   ;;  %s4301_s22 = smov 8  }
  0x19   :  { %50 = dma.hbm_to_vmem [thread:$0]  %s4999_s1, 512, %s45_s28, [#allocation7], %s4300_s21, %s4300_s21, %s4301_s22  }
  0x1a   :  { %s4110_s27 = scalar_lea.hbm %s5001_s3, 1024 }
  0x1b   :  { %p4111_p8 = scmp.ne.s32.totalorder %s5001_s3, %s4110_s27  ;;  %p4114_p9 = scmp.lt.u32.totalorder %s4110_s27, %s5001_s3 }
  0x1d   :  { %p4116_p10 = pnand %p4114_p9, %p4111_p8 }
  0x1f   :  { %4119 = shalt.err (!%p4116_p10)
}
  0x20   :  { %s4120_s17 = scalar_lea.vmem %s4389_s30, 1024  ;;  %p4125_p12 = scmp.lt.s32.totalorder %s4389_s30, %s4389_s30 }
  0x21   :  { %p4121_p11 = scmp.ne.s32.totalorder %s4389_s30, %s4120_s17  ;;  %p4126_p13 = scmp.lt.s32.totalorder %s4120_s17, %s4120_s17 }
  0x23   :  { %p4127_p0 = por %p4126_p13, %p4125_p12 }
  0x25   :  { %p4128_p1 = pnand %p4127_p0, %p4121_p11 }
  0x27   :  { %4131 = shalt.err (!%p4128_p1)
}
  0x28   :  { %s4302_s1 = smov 64   ;;  %s4303_s28 = smov 4  }
  0x29   :  { %74 = dma.hbm_to_vmem [thread:$0]  %s5001_s3, 1024, %s4389_s30, [#allocation10], %s4302_s1, %s4302_s1, %s4303_s28  }
  0x2a   :  { %s4304_s19 = smov [#allocation3]   ;;  %s4305_s23 = smov [#allocation8]  }
  0x2b   :  { %s32_s20 = sshll.u32 %s4304_s19, 4  ;;  %s56_s24 = sshll.u32 %s4305_s23, 4  ;;  %s33_s20 = int_to_ptr.vmem [resolvable:$true] %s32_s20  ;;  %s4426_s24 = int_to_ptr.vmem [resolvable:$true] %s56_s24 }
  0x2c   :  { %s4132_s27 = scalar_lea.hbm %s4998_s0, 256 }
  0x2d   :  { %p4133_p2 = scmp.ne.s32.totalorder %s4998_s0, %s4132_s27  ;;  %p4136_p3 = scmp.lt.u32.totalorder %s4132_s27, %s4998_s0 }
  0x2f   :  { %p4138_p4 = pnand %p4136_p3, %p4133_p2 }
  0x31   :  { %4141 = shalt.err (!%p4138_p4)
}
  0x32   :  { %s4142_s3 = scalar_lea.vmem %s33_s20, 256  ;;  %p4147_p6 = scmp.lt.s32.totalorder %s33_s20, %s33_s20 }
  0x33   :  { %p4143_p5 = scmp.ne.s32.totalorder %s33_s20, %s4142_s3  ;;  %p4148_p7 = scmp.lt.s32.totalorder %s4142_s3, %s4142_s3 }
  0x35   :  { %p4149_p8 = por %p4148_p7, %p4147_p6 }
  0x37   :  { %p4150_p9 = pnand %p4149_p8, %p4143_p5 }
  0x39   :  { %4153 = shalt.err (!%p4150_p9)
}
  0x3a   :  { %38 = dma.hbm_to_vmem [thread:$0]  %s4998_s0, 256, %s33_s20, [#allocation4], %s4300_s21, %s4300_s21, %s4301_s22  }
  0x3b   :  { %s4154_s19 = scalar_lea.hbm %s5000_s2, 512 }
  0x3c   :  { %p4155_p10 = scmp.ne.s32.totalorder %s5000_s2, %s4154_s19  ;;  %p4158_p11 = scmp.lt.u32.totalorder %s4154_s19, %s5000_s2 }
  0x3e   :  { %p4160_p12 = pnand %p4158_p11, %p4155_p10 }
  0x40   :  { %4163 = shalt.err (!%p4160_p12)
}
  0x41   :  { %s4164_s29 = scalar_lea.vmem %s4426_s24, 512  ;;  %p4169_p0 = scmp.lt.s32.totalorder %s4426_s24, %s4426_s24 }
  0x42   :  { %p4165_p13 = scmp.ne.s32.totalorder %s4426_s24, %s4164_s29  ;;  %p4170_p1 = scmp.lt.s32.totalorder %s4164_s29, %s4164_s29 }
  0x44   :  { %p4171_p2 = por %p4170_p1, %p4169_p0 }
  0x46   :  { %p4172_p3 = pnand %p4171_p2, %p4165_p13 }
  0x48   :  { %4175 = shalt.err (!%p4172_p3)
}
  0x49   :  { %62 = dma.hbm_to_vmem [thread:$0]  %s5000_s2, 512, %s4426_s24, [#allocation7], %s4300_s21, %s4300_s21, %s4301_s22  }
  0x4a   :  { %s4306_s14 = smov [#allocation11]   ;;  %s4176_s30 = scalar_lea.hbm %s5002_s4, 16384 }
  0x4b   :  { %s80_s15 = sshll.u32 %s4306_s14, 4  ;;  %p4177_p4 = scmp.ne.s32.totalorder %s5002_s4, %s4176_s30  ;;  %s81_s15 = int_to_ptr.vmem [resolvable:$true] %s80_s15 }
  0x4c   :  { %p4180_p5 = scmp.lt.u32.totalorder %s4176_s30, %s5002_s4 }
  0x4e   :  { %p4182_p6 = pnand %p4180_p5, %p4177_p4 }
  0x50   :  { %4185 = shalt.err (!%p4182_p6)
}
  0x51   :  { %s4186_s23 = scalar_lea.vmem %s81_s15, 16384  ;;  %p4191_p8 = scmp.lt.s32.totalorder %s81_s15, %s81_s15 }
  0x52   :  { %p4187_p7 = scmp.ne.s32.totalorder %s81_s15, %s4186_s23  ;;  %p4192_p9 = scmp.lt.s32.totalorder %s4186_s23, %s4186_s23 }
  0x54   :  { %p4193_p10 = por %p4192_p9, %p4191_p8 }
  0x56   :  { %p4194_p11 = pnand %p4193_p10, %p4187_p7 }
  0x58   :  { %4197 = shalt.err (!%p4194_p11)
}
  0x59   :  { %s4307_s2 = smov 256   ;;  %s4308_s24 = smov 16  }
  0x5a   :  { %86 = dma.hbm_to_vmem [thread:$0]  %s5002_s4, 16384, %s81_s15, [#allocation10], %s4307_s2, %s4307_s2, %s4308_s24  }
  0x5b   :  { %s4309_s27 = smov [#allocation12]   ;;  %s4198_s14 = scalar_lea.hbm %s5007_s9, 2048 }
  0x5c   :  { %s100_s29 = sshll.u32 %s4309_s27, 4  ;;  %p4199_p12 = scmp.ne.s32.totalorder %s5007_s9, %s4198_s14  ;;  %s101_s29 = int_to_ptr.vmem [resolvable:$true] %s100_s29 }
  0x5d   :  { %p4202_p13 = scmp.lt.u32.totalorder %s4198_s14, %s5007_s9 }
  0x5f   :  { %p4204_p0 = pnand %p4202_p13, %p4199_p12 }
  0x61   :  { %4207 = shalt.err (!%p4204_p0)
}
  0x62   :  { %s4208_s8 = scalar_lea.vmem %s101_s29, 2048  ;;  %p4213_p2 = scmp.lt.s32.totalorder %s101_s29, %s101_s29 }
  0x63   :  { %p4209_p1 = scmp.ne.s32.totalorder %s101_s29, %s4208_s8  ;;  %p4214_p3 = scmp.lt.s32.totalorder %s4208_s8, %s4208_s8 }
  0x65   :  { %p4215_p4 = por %p4214_p3, %p4213_p2 }
  0x67   :  { %p4216_p5 = pnand %p4215_p4, %p4209_p1 }
  0x69   :  { %4219 = shalt.err (!%p4216_p5)
}
  0x6a   :  { %106 = dma.hbm_to_vmem [thread:$0]  %s5007_s9, 2048, %s101_s29, [#allocation13], %s4302_s1, %s4302_s1, %s4303_s28  }
  0x6b   :  { %4286 = dma.done.wait [#allocation4], 256  }
  0x6c   :  { %4287 = vsyncadd [#allocation4], 4294967040 }
  0x6d   :  { %4288 = dma.done.wait [#allocation7], 1024  }
  0x6e   :  { %4289 = vsyncadd [#allocation7], 4294966272 }
  0x6f   :  { %4290 = dma.done.wait [#allocation10], 17408  }
  0x70   :  { %4291 = vsyncadd [#allocation10], 4294949888 }
  0x71   :  { %4292 = dma.done.wait [#allocation13], 2048  }
  0x72   :  { %4293 = vsyncadd [#allocation13], 4294965248  ;;  %v3748_v1 = vld [vmem:[#allocation11 + $0x4] ss:$16 sps:$4 sm:$0xff]   ;;  %v3750_v2 = vld [vmem:[#allocation11] ss:$16 sps:$4 sm:$0xff]  }
  0x73   :  { %542 = vmatprep.subr.bf16.mxu0 %v3748_v1  ;;  %v3751_v3 = vld [vmem:[#allocation11 + $0x24] ss:$16 sps:$4 sm:$0xff]   ;;  %v3753_v4 = vld [vmem:[#allocation11 + $0x20] ss:$16 sps:$4 sm:$0xff]   ;;  %v3759_v6 = vld [vmem:[#allocation11 + $0xc] ss:$16 sps:$4 sm:$0xff]  }
  0x74   :  { %543 = vmatpush1.bf16.msra.mxu0 %v3750_v2  ;;  %v3754_v5 = vld [vmem:[#allocation11 + $0x44] ss:$16 sps:$4 sm:$0xff]   ;;  %v3762_v7 = vld [vmem:[#allocation11 + $0x8] ss:$16 sps:$4 sm:$0xff]   ;;  %v3756_v8 = vld [vmem:[#allocation11 + $0x40] ss:$16 sps:$4 sm:$0xff]   ;;  %585 = vmatprep.subr.bf16.mxu1 %v3759_v6 }
  0x75   :  { %544 = vmatprep.subr.bf16.mxu0 %v3751_v3  ;;  %v3757_v9 = vld [vmem:[#allocation11 + $0x64] ss:$16 sps:$4 sm:$0xff]   ;;  %586 = vmatpush1.bf16.msra.mxu1 %v3762_v7  ;;  %v3765_v10 = vld [vmem:[#allocation11 + $0x2c] ss:$16 sps:$4 sm:$0xff]   ;;  %v3768_v11 = vld [vmem:[#allocation11 + $0x28] ss:$16 sps:$4 sm:$0xff]  }
  0x76   :  { %587 = vmatprep.subr.bf16.mxu1 %v3765_v10  ;;  %v3761_v12 = vld [vmem:[#allocation11 + $0x60] ss:$16 sps:$4 sm:$0xff]   ;;  %v3763_v13 = vld [vmem:[#allocation11 + $0x84] ss:$16 sps:$4 sm:$0xff]   ;;  %v3771_v14 = vld [vmem:[#allocation11 + $0x4c] ss:$16 sps:$4 sm:$0xff]  }
  0x77   :  { %v3774_v15 = vld [vmem:[#allocation11 + $0x48] ss:$16 sps:$4 sm:$0xff]   ;;  %v3777_v16 = vld [vmem:[#allocation11 + $0x6c] ss:$16 sps:$4 sm:$0xff]   ;;  %v3767_v17 = vld [vmem:[#allocation11 + $0x80] ss:$16 sps:$4 sm:$0xff]  }
  0x78   :  { %545 = vmatpush1.bf16.msra.mxu0 %v3753_v4  ;;  %v3769_v18 = vld [vmem:[#allocation11 + $0xa4] ss:$16 sps:$4 sm:$0xff]   ;;  %v3780_v19 = vld [vmem:[#allocation11 + $0x68] ss:$16 sps:$4 sm:$0xff]   ;;  %v3783_v20 = vld [vmem:[#allocation11 + $0x8c] ss:$16 sps:$4 sm:$0xff]  }
  0x79   :  { %546 = vmatprep.subr.bf16.mxu0 %v3754_v5  ;;  %588 = vmatpush1.bf16.msra.mxu1 %v3768_v11  ;;  %v3773_v21 = vld [vmem:[#allocation11 + $0xa0] ss:$16 sps:$4 sm:$0xff]   ;;  %v3775_v22 = vld [vmem:[#allocation11 + $0xc4] ss:$16 sps:$4 sm:$0xff]   ;;  %v3786_v23 = vld [vmem:[#allocation11 + $0x88] ss:$16 sps:$4 sm:$0xff]  }
  0x7a   :  { %589 = vmatprep.subr.bf16.mxu1 %v3771_v14  ;;  %v3789_v24 = vld [vmem:[#allocation11 + $0xac] ss:$16 sps:$4 sm:$0xff]   ;;  %v3779_v25 = vld [vmem:[#allocation11 + $0xc0] ss:$16 sps:$4 sm:$0xff]   ;;  %v3781_v26 = vld [vmem:[#allocation11 + $0xe4] ss:$16 sps:$4 sm:$0xff]  }
  0x7b   :  { %v3792_v27 = vld [vmem:[#allocation11 + $0xa8] ss:$16 sps:$4 sm:$0xff]   ;;  %v3795_v28 = vld [vmem:[#allocation11 + $0xcc] ss:$16 sps:$4 sm:$0xff]   ;;  %v3785_v29 = vld [vmem:[#allocation11 + $0xe0] ss:$16 sps:$4 sm:$0xff]  }
  0x7c   :  { %547 = vmatpush1.bf16.msra.mxu0 %v3756_v8  ;;  %v3787_v30 = vld [vmem:[#allocation11 + $0x104] ss:$16 sps:$4 sm:$0xff]   ;;  %v3798_v31 = vld [vmem:[#allocation11 + $0xc8] ss:$16 sps:$4 sm:$0xff]   ;;  %v3801_v32 = vld [vmem:[#allocation11 + $0xec] ss:$16 sps:$4 sm:$0xff]  }
  0x7d   :  { %548 = vmatprep.subr.bf16.mxu0 %v3757_v9  ;;  %590 = vmatpush1.bf16.msra.mxu1 %v3774_v15  ;;  %v3791_v33 = vld [vmem:[#allocation11 + $0x100] ss:$16 sps:$4 sm:$0xff]   ;;  %v3793_v34 = vld [vmem:[#allocation11 + $0x124] ss:$16 sps:$4 sm:$0xff]   ;;  %v3804_v35 = vld [vmem:[#allocation11 + $0xe8] ss:$16 sps:$4 sm:$0xff]  }
  0x7e   :  { %591 = vmatprep.subr.bf16.mxu1 %v3777_v16  ;;  %v3807_v36 = vld [vmem:[#allocation11 + $0x10c] ss:$16 sps:$4 sm:$0xff]   ;;  %v3797_v37 = vld [vmem:[#allocation11 + $0x120] ss:$16 sps:$4 sm:$0xff]   ;;  %v3799_v38 = vld [vmem:[#allocation11 + $0x144] ss:$16 sps:$4 sm:$0xff]  }
  0x7f   :  { %v3810_v39 = vld [vmem:[#allocation11 + $0x108] ss:$16 sps:$4 sm:$0xff]   ;;  %v3813_v40 = vld [vmem:[#allocation11 + $0x12c] ss:$16 sps:$4 sm:$0xff]   ;;  %v130_v41 = vld [vmem:[#allocation6] sm:$0xff]  ;;  %vm4311_vm0 = vmmov 0  }
  0x80   :  { %549 = vmatpush1.bf16.msra.mxu0 %v3761_v12  ;;  %v3803_v42 = vld [vmem:[#allocation11 + $0x140] ss:$16 sps:$4 sm:$0xff]   ;;  %v3805_v43 = vld [vmem:[#allocation11 + $0x164] ss:$16 sps:$4 sm:$0xff]   ;;  %v131_v44 = vld [vmem:[#allocation6 + $0x8] sm:$0xff]  ;;  %vm1986_vm1 = vcmask 1041409  }
  0x81   :  { %550 = vmatprep.subr.bf16.mxu0 %v3763_v13  ;;  %592 = vmatpush1.bf16.msra.mxu1 %v3780_v19  ;;  %v3816_v45 = vld [vmem:[#allocation11 + $0x128] ss:$16 sps:$4 sm:$0xff]   ;;  %v135_v46 = vpack.c.bf16 %v131_v44, %v130_v41  ;;  %v3819_v47 = vld [vmem:[#allocation11 + $0x14c] ss:$16 sps:$4 sm:$0xff]   ;;  %v3809_v48 = vld [vmem:[#allocation11 + $0x160] ss:$16 sps:$4 sm:$0xff]  }
  0x82   :  { %593 = vmatprep.subr.bf16.mxu1 %v3783_v20  ;;  %v3811_v49 = vld [vmem:[#allocation11 + $0x184] ss:$16 sps:$4 sm:$0xff]   ;;  %v3822_v50 = vld [vmem:[#allocation11 + $0x148] ss:$16 sps:$4 sm:$0xff]   ;;  %v3825_v51 = vld [vmem:[#allocation11 + $0x16c] ss:$16 sps:$4 sm:$0xff]  }
  0x83   :  { %574 = vmatprep.mubr.bf16.mxu0 %v135_v46  ;;  %617 = vmatprep.mubr.bf16.mxu1 %v135_v46  ;;  %v3815_v52 = vld [vmem:[#allocation11 + $0x180] ss:$16 sps:$4 sm:$0xff]   ;;  %v3817_v53 = vld [vmem:[#allocation11 + $0x1a4] ss:$16 sps:$4 sm:$0xff]   ;;  %v3828_v54 = vld [vmem:[#allocation11 + $0x168] ss:$16 sps:$4 sm:$0xff]  }
  0x84   :  { %551 = vmatpush1.bf16.msra.mxu0 %v3767_v17  ;;  %v3831_v55 = vld [vmem:[#allocation11 + $0x18c] ss:$16 sps:$4 sm:$0xff]   ;;  %v3821_v56 = vld [vmem:[#allocation11 + $0x1a0] ss:$16 sps:$4 sm:$0xff]   ;;  %v3823_v57 = vld [vmem:[#allocation11 + $0x1c4] ss:$16 sps:$4 sm:$0xff]  }
  0x85   :  { %552 = vmatprep.subr.bf16.mxu0 %v3769_v18  ;;  %594 = vmatpush1.bf16.msra.mxu1 %v3786_v23  ;;  %v3834_v58 = vld [vmem:[#allocation11 + $0x188] ss:$16 sps:$4 sm:$0xff]   ;;  %v3835_v59 = vld [vmem:[#allocation11 + $0x1ac] ss:$16 sps:$4 sm:$0xff]   ;;  %v3827_v60 = vld [vmem:[#allocation11 + $0x1c0] ss:$16 sps:$4 sm:$0xff]  }
  0x86   :  { %595 = vmatprep.subr.bf16.mxu1 %v3789_v24  ;;  %v3829_v61 = vld [vmem:[#allocation11 + $0x1e4] ss:$16 sps:$4 sm:$0xff]   ;;  %v3837_v62 = vld [vmem:[#allocation11 + $0x1a8] ss:$16 sps:$4 sm:$0xff]   ;;  %v3838_v63 = vld [vmem:[#allocation11 + $0x1cc] ss:$16 sps:$4 sm:$0xff]  }
  0x87   :  { %v3833_v0 = vld [vmem:[#allocation11 + $0x1e0] ss:$16 sps:$4 sm:$0xff]   ;;  %v129_v2 = vld [vmem:[#allocation3 + $0x8] sm:$0xff]  ;;  %v3846_v4 = vld [vmem:[#allocation11 + $0x204] ss:$16 sps:$4 sm:$0xff]   ;;  %vm1989_vm2 = vcmask 1042434  }
  0x88   :  { %553 = vmatpush1.bf16.msra.mxu0 %v3773_v21  ;;  %v128_v1 = vld [vmem:[#allocation3] sm:$0xff]  ;;  %v3840_v3 = vld [vmem:[#allocation11 + $0x1c8] ss:$16 sps:$4 sm:$0xff]   ;;  %v3841_v5 = vld [vmem:[#allocation11 + $0x1ec] ss:$16 sps:$4 sm:$0xff]   ;;  %vm1992_vm3 = vcmask 1043459  }
  0x89   :  { %554 = vmatprep.subr.bf16.mxu0 %v3775_v22  ;;  %596 = vmatpush1.bf16.msra.mxu1 %v3792_v27  ;;  %v3844_v6 = vld [vmem:[#allocation11 + $0x200] ss:$16 sps:$4 sm:$0xff]   ;;  %v134_v7 = vpack.c.bf16 %v129_v2, %v128_v1  ;;  %v3843_v8 = vld [vmem:[#allocation11 + $0x1e8] ss:$16 sps:$4 sm:$0xff]   ;;  %v3852_v9 = vld [vmem:[#allocation11 + $0x224] ss:$16 sps:$4 sm:$0xff]  }
  0x8a   :  { %597 = vmatprep.subr.bf16.mxu1 %v3795_v28  ;;  %v3849_v10 = vld [vmem:[#allocation11 + $0x20c] ss:$16 sps:$4 sm:$0xff]   ;;  %v3850_v11 = vld [vmem:[#allocation11 + $0x220] ss:$16 sps:$4 sm:$0xff]   ;;  %v3847_v12 = vld [vmem:[#allocation11 + $0x208] ss:$16 sps:$4 sm:$0xff]  }
  0x8b   :  { %v3858_v13 = vld [vmem:[#allocation11 + $0x244] ss:$16 sps:$4 sm:$0xff]   ;;  %v3855_v14 = vld [vmem:[#allocation11 + $0x22c] ss:$16 sps:$4 sm:$0xff]   ;;  %v3856_v15 = vld [vmem:[#allocation11 + $0x240] ss:$16 sps:$4 sm:$0xff]  }
  0x8c   :  { %555 = vmatpush1.bf16.msra.mxu0 %v3779_v25  ;;  %v3853_v16 = vld [vmem:[#allocation11 + $0x228] ss:$16 sps:$4 sm:$0xff]   ;;  %v3864_v17 = vld [vmem:[#allocation11 + $0x264] ss:$16 sps:$4 sm:$0xff]   ;;  %v3861_v18 = vld [vmem:[#allocation11 + $0x24c] ss:$16 sps:$4 sm:$0xff]  }
  0x8d   :  { %556 = vmatprep.subr.bf16.mxu0 %v3781_v26  ;;  %598 = vmatpush1.bf16.msra.mxu1 %v3798_v31  ;;  %v3862_v19 = vld [vmem:[#allocation11 + $0x260] ss:$16 sps:$4 sm:$0xff]   ;;  %v3859_v20 = vld [vmem:[#allocation11 + $0x248] ss:$16 sps:$4 sm:$0xff]   ;;  %v3867_v21 = vld [vmem:[#allocation11 + $0x26c] ss:$16 sps:$4 sm:$0xff]  }
  0x8e   :  { %599 = vmatprep.subr.bf16.mxu1 %v3801_v32  ;;  %v3865_v22 = vld [vmem:[#allocation11 + $0x268] ss:$16 sps:$4 sm:$0xff]   ;;  %v3870_v23 = vld [vmem:[#allocation11 + $0x284] ss:$16 sps:$4 sm:$0xff]   ;;  %v3873_v24 = vld [vmem:[#allocation11 + $0x28c] ss:$16 sps:$4 sm:$0xff]  }
  0x8f   :  { %v3868_v25 = vld [vmem:[#allocation11 + $0x280] ss:$16 sps:$4 sm:$0xff]   ;;  %v3871_v26 = vld [vmem:[#allocation11 + $0x288] ss:$16 sps:$4 sm:$0xff]   ;;  %v3876_v27 = vld [vmem:[#allocation11 + $0x2a4] ss:$16 sps:$4 sm:$0xff]  }
  0x90   :  { %557 = vmatpush1.bf16.msra.mxu0 %v3785_v29  ;;  %v3879_v28 = vld [vmem:[#allocation11 + $0x2ac] ss:$16 sps:$4 sm:$0xff]   ;;  %v3874_v29 = vld [vmem:[#allocation11 + $0x2a0] ss:$16 sps:$4 sm:$0xff]   ;;  %v3882_v31 = vld [vmem:[#allocation11 + $0x2c4] ss:$16 sps:$4 sm:$0xff]  }
  0x91   :  { %558 = vmatprep.subr.bf16.mxu0 %v3787_v30  ;;  %600 = vmatpush1.bf16.msra.mxu1 %v3804_v35  ;;  %v3877_v30 = vld [vmem:[#allocation11 + $0x2a8] ss:$16 sps:$4 sm:$0xff]   ;;  %v3885_v32 = vld [vmem:[#allocation11 + $0x2cc] ss:$16 sps:$4 sm:$0xff]   ;;  %v3888_v35 = vld [vmem:[#allocation11 + $0x2e4] ss:$16 sps:$4 sm:$0xff]  }
  0x92   :  { %601 = vmatprep.subr.bf16.mxu1 %v3807_v36  ;;  %v3891_v36 = vld [vmem:[#allocation11 + $0x2ec] ss:$16 sps:$4 sm:$0xff]   ;;  %v3892_v41 = vld [vmem:[#allocation11 + $0x300] ss:$16 sps:$4 sm:$0xff]   ;;  %v3901_v46 = vld [vmem:[#allocation11 + $0x328] ss:$16 sps:$4 sm:$0xff]  }
  0x93   :  { %v3903_v44 = vld [vmem:[#allocation11 + $0x32c] ss:$16 sps:$4 sm:$0xff]   ;;  %v3928_v1 = vld [vmem:[#allocation11 + $0x3c0] ss:$16 sps:$4 sm:$0xff]   ;;  %v3931_v2 = vld [vmem:[#allocation11 + $0x3c8] ss:$16 sps:$4 sm:$0xff]  }
  0x94   :  { %559 = vmatpush1.bf16.msra.mxu0 %v3791_v33  ;;  %v3880_v33 = vld [vmem:[#allocation11 + $0x2c0] ss:$16 sps:$4 sm:$0xff]   ;;  %vm1995_vm4 = vcmask 1044484   ;;  %vm1998_vm5 = vcmask 1045509   ;;  %vm2001_vm6 = vcmask 1046534   ;;  %vm2004_vm7 = vcmask 1047559  }
  0x95   :  { %560 = vmatprep.subr.bf16.mxu0 %v3793_v34  ;;  %602 = vmatpush1.bf16.msra.mxu1 %v3810_v39  ;;  %v3883_v34 = vld [vmem:[#allocation11 + $0x2c8] ss:$16 sps:$4 sm:$0xff]   ;;  %v3894_v39 = vld [vmem:[#allocation11 + $0x304] ss:$16 sps:$4 sm:$0xff]   ;;  %vm2022_vm8 = vcmask 64512   ;;  %vm2244_vm9 = vcmask 1043456  }
  0x96   :  { %603 = vmatprep.subr.bf16.mxu1 %v3813_v40  ;;  %v3897_v40 = vld [vmem:[#allocation11 + $0x30c] ss:$16 sps:$4 sm:$0xff]  }
  0x98   :  { %561 = vmatpush1.bf16.msra.mxu0 %v3797_v37  ;;  %v3886_v37 = vld [vmem:[#allocation11 + $0x2e0] ss:$16 sps:$4 sm:$0xff]  }
  0x99   :  { %562 = vmatprep.subr.bf16.mxu0 %v3799_v38  ;;  %604 = vmatpush1.bf16.msra.mxu1 %v3816_v45  ;;  %v3889_v38 = vld [vmem:[#allocation11 + $0x2e8] ss:$16 sps:$4 sm:$0xff]   ;;  %v3898_v45 = vld [vmem:[#allocation11 + $0x320] ss:$16 sps:$4 sm:$0xff]  }
  0x9a   :  { %605 = vmatprep.subr.bf16.mxu1 %v3819_v47  ;;  %v3906_v47 = vld [vmem:[#allocation11 + $0x344] ss:$16 sps:$4 sm:$0xff]  }
  0x9c   :  { %563 = vmatpush1.bf16.msra.mxu0 %v3803_v42  ;;  %v3895_v42 = vld [vmem:[#allocation11 + $0x308] ss:$16 sps:$4 sm:$0xff]  }
  0x9d   :  { %564 = vmatprep.subr.bf16.mxu0 %v3805_v43  ;;  %606 = vmatpush1.bf16.msra.mxu1 %v3822_v50  ;;  %v3900_v43 = vld [vmem:[#allocation11 + $0x324] ss:$16 sps:$4 sm:$0xff]   ;;  %v3907_v50 = vld [vmem:[#allocation11 + $0x348] ss:$16 sps:$4 sm:$0xff]  }
  0x9e   :  { %607 = vmatprep.subr.bf16.mxu1 %v3825_v51  ;;  %v3912_v51 = vld [vmem:[#allocation11 + $0x364] ss:$16 sps:$4 sm:$0xff]  }
  0xa0   :  { %565 = vmatpush1.bf16.msra.mxu0 %v3809_v48  ;;  %v3909_v48 = vld [vmem:[#allocation11 + $0x34c] ss:$16 sps:$4 sm:$0xff]  }
  0xa1   :  { %566 = vmatprep.subr.bf16.mxu0 %v3811_v49  ;;  %608 = vmatpush1.bf16.msra.mxu1 %v3828_v54  ;;  %v3904_v49 = vld [vmem:[#allocation11 + $0x340] ss:$16 sps:$4 sm:$0xff]   ;;  %v3913_v54 = vld [vmem:[#allocation11 + $0x368] ss:$16 sps:$4 sm:$0xff]  }
  0xa2   :  { %609 = vmatprep.subr.bf16.mxu1 %v3831_v55  ;;  %v3918_v55 = vld [vmem:[#allocation11 + $0x384] ss:$16 sps:$4 sm:$0xff]  }
  0xa4   :  { %567 = vmatpush1.bf16.msra.mxu0 %v3815_v52  ;;  %v3915_v52 = vld [vmem:[#allocation11 + $0x36c] ss:$16 sps:$4 sm:$0xff]  }
  0xa5   :  { %568 = vmatprep.subr.bf16.mxu0 %v3817_v53  ;;  %610 = vmatpush1.bf16.msra.mxu1 %v3834_v58  ;;  %v3910_v53 = vld [vmem:[#allocation11 + $0x360] ss:$16 sps:$4 sm:$0xff]   ;;  %v3919_v58 = vld [vmem:[#allocation11 + $0x388] ss:$16 sps:$4 sm:$0xff]  }
  0xa6   :  { %611 = vmatprep.subr.bf16.mxu1 %v3835_v59  ;;  %v3922_v59 = vld [vmem:[#allocation11 + $0x3a0] ss:$16 sps:$4 sm:$0xff]  }
  0xa8   :  { %569 = vmatpush1.bf16.msra.mxu0 %v3821_v56  ;;  %v3921_v56 = vld [vmem:[#allocation11 + $0x38c] ss:$16 sps:$4 sm:$0xff]  }
  0xa9   :  { %570 = vmatprep.subr.bf16.mxu0 %v3823_v57  ;;  %612 = vmatpush1.bf16.msra.mxu1 %v3837_v62  ;;  %v3916_v57 = vld [vmem:[#allocation11 + $0x380] ss:$16 sps:$4 sm:$0xff]   ;;  %v3927_v62 = vld [vmem:[#allocation11 + $0x3ac] ss:$16 sps:$4 sm:$0xff]  }
  0xaa   :  { %613 = vmatprep.subr.bf16.mxu1 %v3838_v63  ;;  %v3930_v63 = vld [vmem:[#allocation11 + $0x3c4] ss:$16 sps:$4 sm:$0xff]  }
  0xac   :  { %571 = vmatpush1.bf16.msra.mxu0 %v3827_v60  ;;  %v3924_v60 = vld [vmem:[#allocation11 + $0x3a4] ss:$16 sps:$4 sm:$0xff]  }
  0xad   :  { %572 = vmatprep.subr.bf16.mxu0 %v3829_v61  ;;  %614 = vmatpush1.bf16.msra.mxu1 %v3840_v3  ;;  %v3925_v61 = vld [vmem:[#allocation11 + $0x3a8] ss:$16 sps:$4 sm:$0xff]   ;;  %v681_v3 = vld [vmem:[#allocation6 + $0x10] sm:$0xff] }
  0xae   :  { %615 = vmatprep.subr.bf16.mxu1 %v3841_v5  ;;  %v3936_v5 = vld [vmem:[#allocation11 + $0x3e4] ss:$16 sps:$4 sm:$0xff]  }
  0xb0   :  { %573 = vmatpush1.bf16.msra.mxu0 %v3833_v0  ;;  %v3933_v0 = vld [vmem:[#allocation11 + $0x3cc] ss:$16 sps:$4 sm:$0xff]  }
  0xb1   :  { %1096 = vmatprep.subr.bf16.mxu0 %v3846_v4  ;;  %616 = vmatpush1.bf16.msra.mxu1 %v3843_v8  ;;  %v682_v4 = vld [vmem:[#allocation6 + $0x18] sm:$0xff]  ;;  %v3934_v8 = vld [vmem:[#allocation11 + $0x3e0] ss:$16 sps:$4 sm:$0xff]  }
  0xb2   :  { %1139 = vmatprep.subr.bf16.mxu1 %v3849_v10  ;;  %v202_v10 = vlaneseq }
  0xb3   :  { %575 = vmatmul.mubr.bf16.vlgmr.msra.gmra.mrb[0].mxu0 %v134_v7 }
  0xb4   :  { %1097 = vmatpush1.bf16.msra.mxu0 %v3844_v6  ;;  %618 = vmatmul.mubr.bf16.vlgmr.msra.gmra.mrb[0].mxu1 %v134_v7  ;;  %v3939_v6 = vld [vmem:[#allocation11 + $0x3ec] ss:$16 sps:$4 sm:$0xff]   ;;  %v687_v7 = vpack.c.bf16 %v682_v4, %v681_v3 }
  0xb5   :  { %1098 = vmatprep.subr.bf16.mxu0 %v3852_v9  ;;  %1140 = vmatpush1.bf16.msra.mxu1 %v3847_v12  ;;  %v3937_v9 = vld [vmem:[#allocation11 + $0x3e8] ss:$16 sps:$4 sm:$0xff]  }
  0xb6   :  { %1141 = vmatprep.subr.bf16.mxu1 %v3855_v14  ;;  %1128 = vmatprep.mubr.bf16.mxu0 %v687_v7 }
  0xb7   :  { %1171 = vmatprep.mubr.bf16.mxu1 %v687_v7 }
  0xb8   :  { %1099 = vmatpush1.bf16.msra.mxu0 %v3850_v11  ;;  %v4490_v11 = vshrl.u32 %v202_v10, 7 }
  0xb9   :  { %1100 = vmatprep.subr.bf16.mxu0 %v3858_v13  ;;  %1142 = vmatpush1.bf16.msra.mxu1 %v3853_v16  ;;  %v200_v13 = vld [vmem:[%s5003_s5] sm:$0xf] }
  0xba   :  { %1143 = vmatprep.subr.bf16.mxu1 %v3861_v18  ;;  %v204_v12 = vsub.s32 0, %v4490_v11  ;;  %v208_v14 = vsub.s32 1, %v4490_v11 }
  0xbc   :  { %1101 = vmatpush1.bf16.msra.mxu0 %v3856_v15  ;;  %v205_v15 = vrot.slane %v200_v13, %v204_v12  ;;  %v209_v16 = vrot.slane %v200_v13, %v208_v14 }
  0xbd   :  { %1102 = vmatprep.subr.bf16.mxu0 %v3864_v17  ;;  %1144 = vmatpush1.bf16.msra.mxu1 %v3859_v20  ;;  %v216_v17 = vsub.s32 3, %v4490_v11 }
  0xbe   :  { %1145 = vmatprep.subr.bf16.mxu1 %v3867_v21 }
  0xc0   :  { %1103 = vmatpush1.bf16.msra.mxu0 %v3862_v19 }
  0xc1   :  { %1146 = vmatpush1.bf16.msra.mxu1 %v3865_v22  ;;  %1104 = vmatprep.subr.bf16.mxu0 %v3870_v23  ;;  %v212_v23 = vsub.s32 2, %v4490_v11 }
  0xc2   :  { %1147 = vmatprep.subr.bf16.mxu1 %v3873_v24 }
  0xc4   :  { %1105 = vmatpush1.bf16.msra.mxu0 %v3868_v25 }
  0xc5   :  { %1148 = vmatpush1.bf16.msra.mxu1 %v3871_v26  ;;  %1106 = vmatprep.subr.bf16.mxu0 %v3876_v27  ;;  %v217_v27 = vrot.slane %v200_v13, %v216_v17 }
  0xc6   :  { %1149 = vmatprep.subr.bf16.mxu1 %v3879_v28 }
  0xc8   :  { %1107 = vmatpush1.bf16.msra.mxu0 %v3874_v29 }
  0xc9   :  { %1150 = vmatpush1.bf16.msra.mxu1 %v3877_v30  ;;  %1108 = vmatprep.subr.bf16.mxu0 %v3882_v31 }
  0xca   :  { %1151 = vmatprep.subr.bf16.mxu1 %v3885_v32 }
  0xcc   :  { %1109 = vmatpush1.bf16.msra.mxu0 %v3880_v33  ;;  %v213_v33 = vrot.slane %v200_v13, %v212_v23 }
  0xcd   :  { %1152 = vmatpush1.bf16.msra.mxu1 %v3883_v34  ;;  %1110 = vmatprep.subr.bf16.mxu0 %v3888_v35 }
  0xce   :  { %1153 = vmatprep.subr.bf16.mxu1 %v3891_v36 }
  0xd0   :  { %1111 = vmatpush1.bf16.msra.mxu0 %v3886_v37 }
  0xd1   :  { %1154 = vmatpush1.bf16.msra.mxu1 %v3889_v38  ;;  %1112 = vmatprep.subr.bf16.mxu0 %v3894_v39 }
  0xd2   :  { %1155 = vmatprep.subr.bf16.mxu1 %v3897_v40 }
  0xd4   :  { %1113 = vmatpush1.bf16.msra.mxu0 %v3892_v41 }
  0xd5   :  { %1156 = vmatpush1.bf16.msra.mxu1 %v3895_v42  ;;  %1114 = vmatprep.subr.bf16.mxu0 %v3900_v43 }
  0xd6   :  { %1157 = vmatprep.subr.bf16.mxu1 %v3903_v44 }
  0xd8   :  { %1115 = vmatpush1.bf16.msra.mxu0 %v3898_v45 }
  0xd9   :  { %1158 = vmatpush1.bf16.msra.mxu1 %v3901_v46  ;;  %1116 = vmatprep.subr.bf16.mxu0 %v3906_v47 }
  0xda   :  { %1159 = vmatprep.subr.bf16.mxu1 %v3909_v48 }
  0xdc   :  { %1117 = vmatpush1.bf16.msra.mxu0 %v3904_v49 }
  0xdd   :  { %1160 = vmatpush1.bf16.msra.mxu1 %v3907_v50  ;;  %1118 = vmatprep.subr.bf16.mxu0 %v3912_v51 }
  0xde   :  { %1161 = vmatprep.subr.bf16.mxu1 %v3915_v52 }
  0xe0   :  { %1119 = vmatpush1.bf16.msra.mxu0 %v3910_v53 }
  0xe1   :  { %1162 = vmatpush1.bf16.msra.mxu1 %v3913_v54  ;;  %1120 = vmatprep.subr.bf16.mxu0 %v3918_v55  ;;  %v132_v55 = vld [vmem:[#allocation8] sm:$0xff] }
  0xe2   :  { %1163 = vmatprep.subr.bf16.mxu1 %v3921_v56 }
  0xe4   :  { %1121 = vmatpush1.bf16.msra.mxu0 %v3916_v57 }
  0xe5   :  { %1164 = vmatpush1.bf16.msra.mxu1 %v3919_v58  ;;  %1122 = vmatprep.subr.bf16.mxu0 %v3924_v60 }
  0xe6   :  { %1165 = vmatprep.subr.bf16.mxu1 %v3927_v62 }
  0xe8   :  { %1123 = vmatpush1.bf16.msra.mxu0 %v3922_v59  ;;  %v133_v59 = vld [vmem:[#allocation8 + $0x8] sm:$0xff] }
  0xe9   :  { %1166 = vmatpush1.bf16.msra.mxu1 %v3925_v61  ;;  %1124 = vmatprep.subr.bf16.mxu0 %v3930_v63 }
  0xea   :  { %1167 = vmatprep.subr.bf16.mxu1 %v3933_v0 }
  0xec   :  { %1125 = vmatpush1.bf16.msra.mxu0 %v3928_v1 }
  0xed   :  { %1168 = vmatpush1.bf16.msra.mxu1 %v3931_v2  ;;  %1126 = vmatprep.subr.bf16.mxu0 %v3936_v5 }
  0xee   :  { %1169 = vmatprep.subr.bf16.mxu1 %v3939_v6 }
  0xf0   :  { %1127 = vmatpush1.bf16.msra.mxu0 %v3934_v8 }
  0xf1   :  { %1170 = vmatpush1.bf16.msra.mxu1 %v3937_v9 }
 0x186   :  { %v576_v18 = vpop.f32.mrb[0].mxu0 }
 0x187   :  { %v577_v19 = vadd.f32 %v576_v18, %v205_v15  ;;  %v578_v20 = vpop.f32.mrb[1].mxu0  ;;  %v619_v31 = vpop.f32.mrb[0].mxu1  ;;  %v4520_v18 = vld [vmem:[%s5005_s7] sm:$0x1] }
 0x188   :  { %v579_v21 = vadd.f32 %v578_v20, %v209_v16  ;;  %v580_v22 = vpop.f32.mrb[2].mxu0  ;;  %v621_v34 = vpop.f32.mrb[1].mxu1  ;;  %v620_v39 = vadd.f32 %v619_v31, %v213_v33  ;;  %v4529_v20 = vld [vmem:[#allocation9 + $0x8] sm:$0xf]  ;;  %v4596_v31 = vld [vmem:[#allocation9 + $0x38] sm:$0xf] }
 0x189   :  { %v3329_v24 = vmul.f32 -1.442695, %v577_v19  ;;  %v581_v25 = vadd.f32 %v580_v22, %v205_v15  ;;  %v582_v26 = vpop.f32.mrb[3].mxu0  ;;  %v622_v35 = vadd.f32 %v621_v34, %v217_v27  ;;  %v623_v36 = vpop.f32.mrb[2].mxu1  ;;  %v4507_v15 = vld [vmem:[#allocation9] sm:$0xf] }
 0x18a   :  { %v3331_v28 = vmul.f32 -1.442695, %v579_v21  ;;  %v583_v29 = vadd.f32 %v582_v26, %v209_v16  ;;  %v625_v37 = vpop.f32.mrb[3].mxu1  ;;  %v624_v41 = vadd.f32 %v623_v36, %v213_v33  ;;  %v4310_v16 = vmov 0.0   ;;  %v4522_v19 = vld [vmem:[#allocation9 + $0x4] sm:$0xf] }
 0x18b   :  { %3956 = vpow2.f32 %v3329_v24  ;;  %v3330_v30 = vmul.f32 -1.442695, %v581_v25  ;;  %v626_v38 = vadd.f32 %v625_v37, %v217_v27  ;;  %v3333_v40 = vmul.f32 -1.442695, %v622_v35  ;;  %3536 = vmatprep.subr.bf16.mxu1 %v4310_v16  ;;  %3560 = vmatprep.subr.bf16.mxu0 %v4310_v16  ;;  %v4531_v21 = vld [vmem:[#allocation9 + $0x10] sm:$0xf] }
 0x18c   :  { %3958 = vpow2.f32 %v3331_v28  ;;  %v3332_v32 = vmul.f32 -1.442695, %v583_v29  ;;  %v4540_v22 = vld [vmem:[#allocation9 + $0x18] sm:$0xf]  ;;  %v4542_v24 = vld [vmem:[#allocation9 + $0xc] sm:$0xf] }
 0x18d   :  { %3960 = vpow2.f32 %v3330_v30  ;;  %v3334_v42 = vmul.f32 -1.442695, %v626_v38  ;;  %v4554_v25 = vld [vmem:[#allocation9 + $0x20] sm:$0xf]  ;;  %v4556_v26 = vld [vmem:[#allocation9 + $0x14] sm:$0xf] }
 0x18e   :  { %3962 = vpow2.f32 %v3332_v32  ;;  %v4568_v27 = vld [vmem:[#allocation9 + $0x28] sm:$0xf]  ;;  %v4570_v28 = vld [vmem:[#allocation9 + $0x1c] sm:$0xf]  ;;  %v4582_v29 = vld [vmem:[#allocation9 + $0x30] sm:$0xf] }
 0x18f   :  { %3964 = vtanh.f32 %v620_v39  ;;  %v4584_v30 = vld [vmem:[#allocation9 + $0x24] sm:$0xf]  ;;  %v4598_v32 = vld [vmem:[#allocation9 + $0x2c] sm:$0xf]  ;;  %v4610_v33 = vld [vmem:[#allocation9 + $0x34] sm:$0xf] }
 0x190   :  { %3966 = vpow2.f32 %v3333_v40  ;;  %v4620_v34 = vld [vmem:[#allocation9 + $0x3c] sm:$0xf]  ;;  %v3335_v35 = vld [vmem:[%s5003_s5 + $0x4] sm:$0xf] }
 0x191   :  { %3968 = vtanh.f32 %v624_v41  ;;  %v759_v36 = vrot.slane %v3335_v35, %v204_v12  ;;  %v763_v37 = vrot.slane %v3335_v35, %v208_v14 }
 0x192   :  { %3970 = vpow2.f32 %v3334_v42 }
 0x195   :  { %v3957_v43 = vpop.eup %3956 }
 0x196   :  { %v3959_v44 = vpop.eup %3958  ;;  %v634_v45 = vadd.f32 1.0, %v3957_v43 }
 0x197   :  { %v3961_v46 = vpop.eup %3960  ;;  %v646_v47 = vadd.f32 1.0, %v3959_v44 }
 0x198   :  { %v3963_v48 = vpop.eup %3962  ;;  %3972 = vrcp.f32 %v634_v45  ;;  %v635_v49 = vadd.f32 1.0, %v3961_v46 }
 0x199   :  { %3974 = vrcp.f32 %v646_v47  ;;  %v647_v50 = vadd.f32 1.0, %v3963_v48  ;;  %v3965_v51 = vpop.eup %3964 }
 0x19a   :  { %3976 = vrcp.f32 %v635_v49  ;;  %v3967_v52 = vpop.eup %3966 }
 0x19b   :  { %3978 = vrcp.f32 %v647_v50  ;;  %v3969_v53 = vpop.eup %3968  ;;  %v660_v57 = vadd.f32 1.0, %v3967_v52 }
 0x19c   :  { %v3971_v54 = vpop.eup %3970 }
 0x19d   :  { %v661_v1 = vadd.f32 1.0, %v3971_v54  ;;  %3980 = vrcp.f32 %v660_v57 }
 0x1a2   :  { %v3973_v56 = vpop.eup %3972 }
 0x1a3   :  { %v3975_v58 = vpop.eup %3974  ;;  %v668_v60 = vmul.f32 %v3973_v56, %v3965_v51  ;;  %v771_v51 = vrot.slane %v3335_v35, %v216_v17 }
 0x1a4   :  { %v3977_v61 = vpop.eup %3976  ;;  %v666_v62 = vmul.f32 %v3975_v58, %v132_v55 }
 0x1a5   :  { %v3979_v63 = vpop.eup %3978  ;;  %v669_v0 = vmul.f32 %v3977_v61, %v3969_v53  ;;  %v767_v53 = vrot.slane %v3335_v35, %v212_v23 }
 0x1a6   :  { %v667_v2 = vmul.f32 %v3979_v63, %v133_v59  ;;  %v670_v3 = vadd.f32 %v668_v60, %v666_v62 }
 0x1a7   :  { %v3981_v5 = vpop.eup %3980 }
 0x1a8   :  { %3982 = vtanh.f32 %v670_v3  ;;  %678 = vst [vmem:[#allocation17] sm:$0xff] %v670_v3  ;;  %v671_v4 = vadd.f32 %v669_v0, %v667_v2 }
 0x1a9   :  { %3984 = vrcp.f32 %v661_v1 }
 0x1aa   :  { %3986 = vtanh.f32 %v671_v4  ;;  %679 = vst [vmem:[#allocation17 + $0x8] sm:$0xff] %v671_v4  ;;  %v684_v4 = vld [vmem:[#allocation8 + $0x10] sm:$0xff] }
 0x1b2   :  { %v3983_v6 = vpop.eup %3982 }
 0x1b3   :  { %v3985_v7 = vpop.eup %3984  ;;  %v674_v8 = vmul.f32 %v3983_v6, %v3981_v5 }
 0x1b4   :  { %v3987_v9 = vpop.eup %3986 }
 0x1b5   :  { %v675_v10 = vmul.f32 %v3987_v9, %v3985_v7  ;;  %676 = vst [vmem:[#allocation15] sm:$0xff] %v674_v8 }
 0x1b7   :  { %v686_v13 = vpack.c.bf16 %v675_v10, %v674_v8  ;;  %677 = vst [vmem:[#allocation15 + $0x8] sm:$0xff] %v675_v10 }
 0x1b9   :  { %1129 = vmatmul.mubr.bf16.vlgmr.msra.gmra.mrb[4].mxu0 %v686_v13  ;;  %1172 = vmatmul.mubr.bf16.vlgmr.msra.gmra.mrb[4].mxu1 %v686_v13 }
 0x1ba   :  { %3538 = vmatprep.mubr.msk.bf16.mxu1 %vm4311_vm0, %v4310_v16  ;;  %3537 = vmatpush3.bf16.xpose.msra.mxu1 %v4507_v15 }
 0x1bb   :  { %3542 = vmatprep.subr.bf16.mxu1 %v4310_v16  ;;  %3562 = vmatprep.mubr.msk.bf16.mxu0 %vm4311_vm0, %v4310_v16 }
 0x1bc   :  { %3561 = vmatpush3.bf16.xpose.msra.mxu0 %v4531_v21 }
 0x1bd   :  { %3572 = vmatprep.subr.bf16.mxu0 %v4310_v16 }
 0x1c1   :  { %3539 = vmatmul.mubr.bf16.vlgmr.msra.gmra.mrb[8].mxu1 %v4520_v18 }
 0x1c2   :  { %3543 = vmatpush3.bf16.xpose.msra.mxu1 %v4522_v19  ;;  %3544 = vmatprep.mubr.msk.bf16.mxu1 %vm4311_vm0, %v4310_v16 }
 0x1c3   :  { %3548 = vmatprep.subr.bf16.mxu1 %v4310_v16  ;;  %3563 = vmatmul.mubr.bf16.vlgmr.msra.gmra.mrb[8].mxu0 %v4520_v18 }
 0x1c4   :  { %3573 = vmatpush3.bf16.xpose.msra.mxu0 %v4540_v22  ;;  %3574 = vmatprep.mubr.msk.bf16.mxu0 %vm4311_vm0, %v4310_v16 }
 0x1c5   :  { %3584 = vmatprep.subr.bf16.mxu0 %v4310_v16 }
 0x1c9   :  { %3545 = vmatmul.mubr.bf16.vlgmr.msra.gmra.mrb[12].mxu1 %v4520_v18 }
 0x1ca   :  { %3549 = vmatpush3.bf16.xpose.msra.mxu1 %v4529_v20  ;;  %3550 = vmatprep.mubr.msk.bf16.mxu1 %vm4311_vm0, %v4310_v16 }
 0x1cb   :  { %3554 = vmatprep.subr.bf16.mxu1 %v4310_v16  ;;  %3575 = vmatmul.mubr.bf16.vlgmr.msra.gmra.mrb[12].mxu0 %v4520_v18 }
 0x1cc   :  { %3585 = vmatpush3.bf16.xpose.msra.mxu0 %v4554_v25  ;;  %3586 = vmatprep.mubr.msk.bf16.mxu0 %vm4311_vm0, %v4310_v16 }
 0x1cd   :  { %3596 = vmatprep.subr.bf16.mxu0 %v4310_v16 }
 0x1d1   :  { %3551 = vmatmul.mubr.bf16.vlgmr.msra.gmra.mrb[16].mxu1 %v4520_v18 }
 0x1d2   :  { %3555 = vmatpush3.bf16.xpose.msra.mxu1 %v4542_v24  ;;  %3556 = vmatprep.mubr.msk.bf16.mxu1 %vm4311_vm0, %v4310_v16 }
 0x1d3   :  { %3566 = vmatprep.subr.bf16.mxu1 %v4310_v16  ;;  %3587 = vmatmul.mubr.bf16.vlgmr.msra.gmra.mrb[16].mxu0 %v4520_v18 }
 0x1d4   :  { %3597 = vmatpush3.bf16.xpose.msra.mxu0 %v4568_v27  ;;  %3598 = vmatprep.mubr.msk.bf16.mxu0 %vm4311_vm0, %v4310_v16 }
 0x1d5   :  { %3608 = vmatprep.subr.bf16.mxu0 %v4310_v16 }
 0x1d9   :  { %3557 = vmatmul.mubr.bf16.vlgmr.msra.gmra.mrb[20].mxu1 %v4520_v18 }
 0x1da   :  { %3567 = vmatpush3.bf16.xpose.msra.mxu1 %v4556_v26  ;;  %3568 = vmatprep.mubr.msk.bf16.mxu1 %vm4311_vm0, %v4310_v16 }
 0x1db   :  { %3578 = vmatprep.subr.bf16.mxu1 %v4310_v16  ;;  %3599 = vmatmul.mubr.bf16.vlgmr.msra.gmra.mrb[20].mxu0 %v4520_v18 }
 0x1dc   :  { %3609 = vmatpush3.bf16.xpose.msra.mxu0 %v4582_v29  ;;  %3610 = vmatprep.mubr.msk.bf16.mxu0 %vm4311_vm0, %v4310_v16 }
 0x1dd   :  { %3620 = vmatprep.subr.bf16.mxu0 %v4310_v16 }
 0x1e1   :  { %3569 = vmatmul.mubr.bf16.vlgmr.msra.gmra.mrb[24].mxu1 %v4520_v18 }
 0x1e2   :  { %3579 = vmatpush3.bf16.xpose.msra.mxu1 %v4570_v28  ;;  %3580 = vmatprep.mubr.msk.bf16.mxu1 %vm4311_vm0, %v4310_v16 }
 0x1e3   :  { %3590 = vmatprep.subr.bf16.mxu1 %v4310_v16  ;;  %3611 = vmatmul.mubr.bf16.vlgmr.msra.gmra.mrb[24].mxu0 %v4520_v18 }
 0x1e4   :  { %3621 = vmatpush3.bf16.xpose.msra.mxu0 %v4596_v31  ;;  %3622 = vmatprep.mubr.msk.bf16.mxu0 %vm4311_vm0, %v4310_v16 }
 0x1e5   :  { %3632 = vmatprep.subr.bf16.mxu0 %v4310_v16 }
 0x1e9   :  { %3581 = vmatmul.mubr.bf16.vlgmr.msra.gmra.mrb[28].mxu1 %v4520_v18 }
 0x1ea   :  { %3591 = vmatpush3.bf16.xpose.msra.mxu1 %v4584_v30  ;;  %3592 = vmatprep.mubr.msk.bf16.mxu1 %vm4311_vm0, %v4310_v16 }
 0x1eb   :  { %3602 = vmatprep.subr.bf16.mxu1 %v4310_v16  ;;  %3623 = vmatmul.mubr.bf16.vlgmr.msra.gmra.mrb[28].mxu0 %v4520_v18 }
 0x1ec   :  { %3634 = vmatprep.mubr.msk.bf16.mxu0 %vm4311_vm0, %v4310_v16 }
 0x1f1   :  { %3593 = vmatmul.mubr.bf16.vlgmr.msra.gmra.mrb[32].mxu1 %v4520_v18 }
 0x1f2   :  { %3603 = vmatpush3.bf16.xpose.msra.mxu1 %v4598_v32  ;;  %3604 = vmatprep.mubr.msk.bf16.mxu1 %vm4311_vm0, %v4310_v16 }
 0x1f3   :  { %3614 = vmatprep.subr.bf16.mxu1 %v4310_v16 }
 0x1f9   :  { %3605 = vmatmul.mubr.bf16.vlgmr.msra.gmra.mrb[36].mxu1 %v4520_v18 }
 0x1fa   :  { %3615 = vmatpush3.bf16.xpose.msra.mxu1 %v4610_v33  ;;  %3616 = vmatprep.mubr.msk.bf16.mxu1 %vm4311_vm0, %v4310_v16 }
 0x1fb   :  { %3626 = vmatprep.subr.bf16.mxu1 %v4310_v16 }
 0x201   :  { %3617 = vmatmul.mubr.bf16.vlgmr.msra.gmra.mrb[40].mxu1 %v4520_v18 }
 0x202   :  { %3627 = vmatpush3.bf16.xpose.msra.mxu1 %v4620_v34  ;;  %3628 = vmatprep.mubr.msk.bf16.mxu1 %vm4311_vm0, %v4310_v16 }
 0x203   :  { %3638 = vmatprep.subr.bf16.mxu1 %v4310_v16 }
 0x209   :  { %3629 = vmatmul.mubr.bf16.vlgmr.msra.gmra.mrb[44].mxu1 %v4520_v18  ;;  %v685_v18 = vld [vmem:[#allocation8 + $0x18] sm:$0xff] }
 0x20a   :  { %3640 = vmatprep.mubr.msk.bf16.mxu1 %vm4311_vm0, %v4310_v16 }
 0x28c   :  { %v1130_v38 = vpop.f32.mrb[4].mxu0  ;;  %v1173_v39 = vpop.f32.mrb[4].mxu1 }
 0x28d   :  { %v1131_v40 = vadd.f32 %v1130_v38, %v759_v36  ;;  %v1132_v41 = vpop.f32.mrb[5].mxu0  ;;  %v1175_v42 = vpop.f32.mrb[5].mxu1  ;;  %v1174_v55 = vadd.f32 %v1173_v39, %v767_v53 }
 0x28e   :  { %v1133_v43 = vadd.f32 %v1132_v41, %v763_v37  ;;  %v1134_v44 = vpop.f32.mrb[6].mxu0  ;;  %v1177_v45 = vpop.f32.mrb[6].mxu1  ;;  %v1176_v54 = vadd.f32 %v1175_v42, %v771_v51 }
 0x28f   :  { %v3400_v46 = vmul.f32 -1.442695, %v1131_v40  ;;  %v1135_v47 = vadd.f32 %v1134_v44, %v759_v36  ;;  %v1136_v48 = vpop.f32.mrb[7].mxu0  ;;  %v1179_v49 = vpop.f32.mrb[7].mxu1  ;;  %v1178_v58 = vadd.f32 %v1177_v45, %v767_v53 }
 0x290   :  { %v3402_v50 = vmul.f32 -1.442695, %v1133_v43  ;;  %v1137_v12 = vadd.f32 %v1136_v48, %v763_v37  ;;  %v3404_v56 = vmul.f32 -1.442695, %v1176_v54  ;;  %v1180_v57 = vadd.f32 %v1179_v49, %v771_v51  ;;  %v3406_v43 = vld [vmem:[%s5004_s6] ss:$0 sm:$0xff] }
 0x291   :  { %3988 = vpow2.f32 %v3400_v46  ;;  %v3401_v52 = vmul.f32 -1.442695, %v1135_v47  ;;  %v4312_v51 = vmov 0   ;;  %s4313_s6 = smov [#allocation15]  }
 0x292   :  { %3990 = vpow2.f32 %v3402_v50  ;;  %v3403_v14 = vmul.f32 -1.442695, %v1137_v12  ;;  %v3405_v17 = vmul.f32 -1.442695, %v1180_v57  ;;  %3746 = vset.pattern.permute.xlu1 %v4312_v51  ;;  %3747 = vset.pattern.permute.xlu0 %v4312_v51  ;;  %s3231_s25 = sshll.u32 %s4313_s6, 4  ;;  %s3232_s25 = int_to_ptr.vmem [resolvable:$true] %s3231_s25 }
 0x293   :  { %3992 = vpow2.f32 %v3401_v52  ;;  %s4220_s26 = scalar_lea.vmem %s3232_s25, 512  ;;  %p4225_p7 = scmp.lt.s32.totalorder %s3232_s25, %s3232_s25 }
 0x294   :  { %3994 = vpow2.f32 %v3403_v14  ;;  %v4654_v12 = vpop.f32.mrb[8].mxu1  ;;  %p4221_p6 = scmp.ne.s32.totalorder %s3232_s25, %s4220_s26  ;;  %p4226_p8 = scmp.lt.s32.totalorder %s4220_s26, %s4220_s26 }
 0x295   :  { %3996 = vtanh.f32 %v1174_v55  ;;  %v3540_v52 = vpop.f32.mrb[9].mxu1 }
 0x296   :  { %3998 = vpow2.f32 %v3404_v56  ;;  %v1312_v14 = vpop.f32.mrb[10].mxu1  ;;  %p4227_p9 = por %p4226_p8, %p4225_p7 }
 0x297   :  { %4000 = vtanh.f32 %v1178_v58  ;;  %v3541_v53 = vpop.f32.mrb[11].mxu1  ;;  %v4658_v58 = vpop.f32.mrb[8].mxu0 }
 0x298   :  { %v3407_v53 = vld [vmem:[#allocation2] ss:$0 sm:$0xff]  ;;  %p4228_p10 = pnand %p4227_p9, %p4221_p6 }
 0x29b   :  { %v3989_v59 = vpop.eup %3988 }
 0x29c   :  { %v3991_v60 = vpop.eup %3990  ;;  %v1188_v61 = vadd.f32 1.0, %v3989_v59  ;;  %v4656_v54 = vpop.f32.mrb[12].mxu1 }
 0x29d   :  { %v1200_v62 = vadd.f32 1.0, %v3991_v60  ;;  %v3993_v63 = vpop.eup %3992  ;;  %v3546_v55 = vpop.f32.mrb[13].mxu1 }
 0x29e   :  { %4002 = vrcp.f32 %v1188_v61  ;;  %v1189_v11 = vadd.f32 1.0, %v3993_v63  ;;  %v3995_v23 = vpop.eup %3994  ;;  %v1352_v56 = vpop.f32.mrb[14].mxu1 }
 0x29f   :  { %4004 = vrcp.f32 %v1200_v62  ;;  %v1201_v0 = vadd.f32 1.0, %v3995_v23  ;;  %v3997_v1 = vpop.eup %3996  ;;  %v3547_v57 = vpop.f32.mrb[15].mxu1 }
 0x2a0   :  { %4006 = vpow2.f32 %v3405_v17  ;;  %v3999_v2 = vpop.eup %3998  ;;  %v3564_v59 = vpop.f32.mrb[9].mxu0 }
 0x2a1   :  { %4008 = vrcp.f32 %v1189_v11  ;;  %v4001_v3 = vpop.eup %4000  ;;  %v1214_v8 = vadd.f32 1.0, %v3999_v2  ;;  %v1472_v61 = vpop.f32.mrb[10].mxu0 }
 0x2a2   :  { %4010 = vrcp.f32 %v1201_v0  ;;  %v3565_v62 = vpop.f32.mrb[11].mxu0 }
 0x2a3   :  { %4012 = vrcp.f32 %v1214_v8  ;;  %v4662_v23 = vpop.f32.mrb[12].mxu0 }
 0x2a4   :  { %v4660_v60 = vpop.f32.mrb[16].mxu1  ;;  %v3576_v0 = vpop.f32.mrb[13].mxu0 }
 0x2a5   :  { %v3552_v17 = vpop.f32.mrb[17].mxu1  ;;  %v1552_v2 = vpop.f32.mrb[14].mxu0 }
 0x2a6   :  { %v1392_v63 = vpop.f32.mrb[18].mxu1 }
 0x2a7   :  { %v3553_v11 = vpop.f32.mrb[19].mxu1 }
 0x2a8   :  { %v4003_v5 = vpop.eup %4002 }
 0x2a9   :  { %v4005_v6 = vpop.eup %4004  ;;  %v1222_v7 = vmul.f32 %v4003_v5, %v3997_v1 }
 0x2aa   :  { %v4007_v9 = vpop.eup %4006  ;;  %v1220_v10 = vmul.f32 %v4005_v6, %v684_v4  ;;  %v3577_v4 = vpop.f32.mrb[15].mxu0 }
 0x2ab   :  { %v4009_v13 = vpop.eup %4008  ;;  %v1215_v38 = vadd.f32 1.0, %v4007_v9 }
 0x2ac   :  { %v1223_v35 = vmul.f32 %v4009_v13, %v4001_v3  ;;  %v1224_v36 = vadd.f32 %v1222_v7, %v1220_v10  ;;  %v4011_v37 = vpop.eup %4010  ;;  %v4664_v1 = vpop.f32.mrb[20].mxu1 }
 0x2ad   :  { %v1221_v39 = vmul.f32 %v4011_v37, %v685_v18  ;;  %v4013_v41 = vpop.eup %4012  ;;  %v3558_v3 = vpop.f32.mrb[21].mxu1 }
 0x2ae   :  { %4014 = vtanh.f32 %v1224_v36  ;;  %1234 = vst [vmem:[#allocation17 + $0x10] sm:$0xff] %v1224_v36  ;;  %v1432_v5 = vpop.f32.mrb[22].mxu1  ;;  %v4666_v7 = vpop.f32.mrb[16].mxu0 }
 0x2af   :  { %v1225_v40 = vadd.f32 %v1223_v35, %v1221_v39  ;;  %4016 = vrcp.f32 %v1215_v38  ;;  %v3559_v6 = vpop.f32.mrb[23].mxu1  ;;  %v3588_v8 = vpop.f32.mrb[17].mxu0 }
 0x2b0   :  { %v1632_v10 = vpop.f32.mrb[18].mxu0 }
 0x2b1   :  { %1235 = vst [vmem:[#allocation17 + $0x18] sm:$0xff] %v1225_v40  ;;  %4018 = vtanh.f32 %v1225_v40  ;;  %v3589_v18 = vpop.f32.mrb[19].mxu0 }
 0x2b2   :  { %v4670_v37 = vpop.f32.mrb[20].mxu0 }
 0x2b3   :  { %v3600_v38 = vpop.f32.mrb[21].mxu0 }
 0x2b4   :  { %v4668_v9 = vpop.f32.mrb[24].mxu1  ;;  %v1712_v40 = vpop.f32.mrb[22].mxu0 }
 0x2b5   :  { %v3570_v13 = vpop.f32.mrb[25].mxu1 }
 0x2b6   :  { %v1512_v35 = vpop.f32.mrb[26].mxu1 }
 0x2b7   :  { %v3571_v36 = vpop.f32.mrb[27].mxu1 }
 0x2b8   :  { %v4015_v42 = vpop.eup %4014 }
 0x2b9   :  { %v4644_v44 = vmul.f32 %v4015_v42, %v4013_v41  ;;  %v4017_v45 = vpop.eup %4016  ;;  %v3601_v42 = vpop.f32.mrb[23].mxu0 }
 0x2ba   :  { %v4676_v61 = vpop.f32.mrb[24].mxu0 }
 0x2bb   :  { %v1259_v46 = vmul.f32 %v3406_v43, %v4644_v44  ;;  %1231 = vst [vmem:[#allocation15 + $0x10] sm:$0xff] %v4644_v44  ;;  %v4019_v47 = vpop.eup %4018  ;;  %v3612_v11 = vpop.f32.mrb[25].mxu0 }
 0x2bc   :  { %v4648_v48 = vmul.f32 %v4019_v47, %v4017_v45  ;;  %v1589_v39 = vpop.f32.mrb[28].mxu1  ;;  %v1792_v2 = vpop.f32.mrb[26].mxu0 }
 0x2bd   :  { %1261 = vadd.xlane.f32.xlu0 %v1259_v46  ;;  %v3582_v41 = vpop.f32.mrb[29].mxu1  ;;  %v3613_v4 = vpop.f32.mrb[27].mxu0 }
 0x2be   :  { %v1260_v49 = vmul.f32 %v3406_v43, %v4648_v48  ;;  %1232 = vst [vmem:[#allocation15 + $0x18] sm:$0xff] %v4648_v48  ;;  %v3025_v50 = vpack.c.bf16 %v4648_v48, %v4644_v44  ;;  %v1592_v43 = vpop.f32.mrb[30].mxu1  ;;  %v1869_v6 = vpop.f32.mrb[28].mxu0  ;;  %v3948_v44 = vld [vmem:[#allocation12 + $0x60] sm:$0xff]  }
 0x2bf   :  { %v3583_v45 = vpop.f32.mrb[31].mxu1  ;;  %v3624_v8 = vpop.f32.mrb[29].mxu0  ;;  %v3949_v48 = vld [vmem:[#allocation12 + $0x20] sm:$0xff]  }
 0x2c0   :  { %v1872_v10 = vpop.f32.mrb[30].mxu0 }
 0x2c1   :  { %1263 = vadd.xlane.f32.xlu0 %v1260_v49  ;;  %v3625_v13 = vpop.f32.mrb[31].mxu0 }
 0x2c4   :  { %v4672_v46 = vpop.f32.mrb[32].mxu1 }
 0x2c5   :  { %v3594_v47 = vpop.f32.mrb[33].mxu1 }
 0x2c6   :  { %v1672_v49 = vpop.f32.mrb[34].mxu1 }
 0x2c7   :  { %v3595_v51 = vpop.f32.mrb[35].mxu1 }
 0x2cc   :  { %v4674_v52 = vpop.f32.mrb[36].mxu1 }
 0x2cd   :  { %v3606_v14 = vpop.f32.mrb[37].mxu1 }
 0x2ce   :  { %v1752_v55 = vpop.f32.mrb[38].mxu1 }
 0x2cf   :  { %v3607_v56 = vpop.f32.mrb[39].mxu1 }
 0x2d4   :  { %v4678_v62 = vpop.f32.mrb[40].mxu1 }
 0x2d5   :  { %v3618_v0 = vpop.f32.mrb[41].mxu1 }
 0x2d6   :  { %v1832_v3 = vpop.f32.mrb[42].mxu1 }
 0x2d7   :  { %v3619_v5 = vpop.f32.mrb[43].mxu1 }
 0x2dc   :  { %v1909_v18 = vpop.f32.mrb[44].mxu1 }
 0x2dd   :  { %v3630_v35 = vpop.f32.mrb[45].mxu1 }
 0x2de   :  { %v1912_v36 = vpop.f32.mrb[46].mxu1 }
 0x2df   :  { %v3631_v38 = vpop.f32.mrb[47].mxu1 }
 0x34a   :  { %v1262_v57 = vpop.xlane.xlu0 %1261 }
 0x34b   :  { %v1272_v59 = vadd.f32 %v3407_v53, %v1262_v57 }
 0x34d   :  { %1917 = vperm.xlu1 %3746, %v1272_v59  }
 0x34e   :  { %v1264_v17 = vpop.xlane.xlu0 %1263 }
 0x34f   :  { %v1273_v63 = vadd.f32 %v3407_v53, %v1264_v17 }
 0x351   :  { %1921 = vperm.xlu1 %3746, %v1273_v63  }
 0x3cc   :  { %v1918_v40 = vpop.permute.xlu1 %1917 }
 0x3cd   :  { %v1923_v41 = vrot.slane %v1918_v40, 1  ;;  %v1924_v42 = vrot.slane %v1918_v40, 2  ;;  %v1925_v43 = vrot.slane %v1918_v40, 3  ;;  %v1926_v45 = vrot.slane %v1918_v40, 4 }
 0x3ce   :  { %v1927_v47 = vrot.slane %v1918_v40, 5  ;;  %v1928_v49 = vrot.slane %v1918_v40, 6  ;;  %v1929_v51 = vrot.slane %v1918_v40, 7  ;;  %v4693_v59 = vadd.f32 %v1918_v40, %v4654_v12 }
 0x3cf   :  { %v4681_v14 = vadd.f32 %v1923_v41, %v4656_v54  ;;  %v4684_v53 = vadd.f32 %v1924_v42, %v4660_v60  ;;  %v4687_v55 = vadd.f32 %v1925_v43, %v4664_v1  ;;  %v4690_v57 = vadd.f32 %v1926_v45, %v4658_v58 }
 0x3d0   :  { %v1922_v56 = vpop.permute.xlu1 %1921  ;;  %v4696_v54 = vadd.f32 %v1927_v47, %v4668_v9  ;;  %v4699_v60 = vadd.f32 %v1928_v49, %v4662_v23  ;;  %v4701_v17 = vadd.f32 %v1929_v51, %v1589_v39 }
 0x3d1   :  { %v1930_v1 = vrot.slane %v1922_v56, 1  ;;  %v1931_v63 = vrot.slane %v1922_v56, 2  ;;  %v1985_v11 = vrot.slane %v4681_v14, 7  ;;  %v1988_v58 = vrot.slane %v4684_v53, 6 }
 0x3d2   :  { %v1935_v0 = vrot.slane %v1922_v56, 6  ;;  %v1936_v2 = vrot.slane %v1922_v56, 7  ;;  %v1991_v3 = vrot.slane %v4687_v55, 5  ;;  %v1994_v9 = vrot.slane %v4690_v57, 4 }
 0x3d3   :  { %v1987_v12 = vsel %vm1986_vm1, %v1985_v11, %v4693_v59  ;;  %v1932_v23 = vrot.slane %v1922_v56, 3  ;;  %v1933_v4 = vrot.slane %v1922_v56, 4  ;;  %v1997_v5 = vrot.slane %v4696_v54, 3 }
 0x3d4   :  { %v1990_v39 = vsel %vm1989_vm2, %v1988_v58, %v1987_v12  ;;  %v2000_v8 = vrot.slane %v4699_v60, 2  ;;  %v1934_v10 = vrot.slane %v1922_v56, 5  ;;  %v2003_v35 = vrot.slane %v4701_v17, 1 }
 0x3d5   :  { %v1993_v13 = vsel %vm1992_vm3, %v1991_v3, %v1990_v39  ;;  %v1962_v36 = vadd.f32 %v1930_v1, %v4672_v46  ;;  %v4716_v38 = vadd.f32 %v1931_v63, %v4670_v37  ;;  %v4720_v41 = vadd.f32 %v1922_v56, %v4666_v7 }
 0x3d6   :  { %v1996_v40 = vsel %vm1995_vm4, %v1994_v9, %v1993_v13  ;;  %v1964_v42 = vadd.f32 %v1932_v23, %v4674_v52  ;;  %v1965_v43 = vadd.f32 %v1933_v4, %v4676_v61  ;;  %v1966_v47 = vadd.f32 %v1934_v10, %v4678_v62 }
 0x3d7   :  { %v1999_v45 = vsel %vm1998_vm5, %v1997_v5, %v1996_v40  ;;  %v2006_v49 = vrot.slane %v1962_v36, 7  ;;  %v2008_v51 = vrot.slane %v4716_v38, 6  ;;  %v1967_v46 = vadd.f32 %v1935_v0, %v1869_v6 }
 0x3d8   :  { %v2002_v37 = vsel %vm2001_vm6, %v2000_v8, %v1999_v45  ;;  %v4728_v1 = vadd.f32 %v1936_v2, %v1909_v18  ;;  %v2010_v52 = vrot.slane %v1964_v42, 5  ;;  %v2012_v11 = vrot.slane %v1965_v43, 4 }
 0x3d9   :  { %v2005_v63 = vsel %vm2004_vm7, %v2003_v35, %v2002_v37  ;;  %v2007_v7 = vsel %vm1986_vm1, %v2006_v49, %v4720_v41  ;;  %v2014_v58 = vrot.slane %v1966_v47, 3  ;;  %v2016_v6 = vrot.slane %v1967_v46, 2 }
 0x3da   :  { %v2023_v61 = vsel %vm2022_vm8, %v2005_v63, -inf  ;;  %v2009_v56 = vsel %vm1989_vm2, %v2008_v51, %v2007_v7  ;;  %v2018_v18 = vrot.slane %v4728_v1, 1 }
 0x3db   :  { %2024 = vmax.xlane.f32.xlu0 %v2023_v61  ;;  %v2011_v62 = vsel %vm1992_vm3, %v2010_v52, %v2009_v56 }
 0x3dc   :  { %v2013_v0 = vsel %vm1995_vm4, %v2012_v11, %v2011_v62 }
 0x3dd   :  { %v2015_v2 = vsel %vm1998_vm5, %v2014_v58, %v2013_v0 }
 0x3de   :  { %v2017_v3 = vsel %vm2001_vm6, %v2016_v6, %v2015_v2 }
 0x3df   :  { %v2019_v12 = vsel %vm2004_vm7, %v2018_v18, %v2017_v3 }
 0x3e0   :  { %v2026_v9 = vsel %vm2022_vm8, %v2019_v12, -inf }
 0x3e1   :  { %2027 = vmax.xlane.f32.xlu1 %v2026_v9 }
 0x468   :  { %v2025_v23 = vpop.xlane.xlu0 %2024 }
 0x469   :  { %v2031_v4 = vrot.slane %v2025_v23, 1  ;;  %v2032_v39 = vrot.slane %v2025_v23, 2  ;;  %v2033_v5 = vrot.slane %v2025_v23, 3  ;;  %v2034_v8 = vrot.slane %v2025_v23, 4 }
 0x46a   :  { %v2035_v10 = vrot.slane %v2025_v23, 5  ;;  %v2061_v13 = vsub.f32 %v4693_v59, %v2025_v23  ;;  %v2036_v51 = vrot.slane %v2025_v23, 6  ;;  %v2037_v56 = vrot.slane %v2025_v23, 7 }
 0x46b   :  { %v2062_v35 = vsub.f32 %v4681_v14, %v2031_v4  ;;  %v2063_v40 = vsub.f32 %v4684_v53, %v2032_v39  ;;  %v2064_v45 = vsub.f32 %v4687_v55, %v2033_v5  ;;  %v2065_v49 = vsub.f32 %v4690_v57, %v2034_v8 }
 0x46c   :  { %v2066_v37 = vsub.f32 %v4696_v54, %v2035_v10  ;;  %v2077_v63 = vmul.f32 1.442695, %v2061_v13  ;;  %v2067_v18 = vsub.f32 %v4699_v60, %v2036_v51 }
 0x46d   :  { %v2079_v7 = vmul.f32 1.442695, %v2062_v35  ;;  %v2081_v52 = vmul.f32 1.442695, %v2063_v40  ;;  %v2083_v61 = vmul.f32 1.442695, %v2064_v45 }
 0x46e   :  { %4020 = vpow2.f32 %v2077_v63  ;;  %v2085_v11 = vmul.f32 1.442695, %v2065_v49  ;;  %v2028_v62 = vpop.xlane.xlu1 %2027  ;;  %v2087_v59 = vmul.f32 1.442695, %v2066_v37 }
 0x46f   :  { %4022 = vpow2.f32 %v2079_v7  ;;  %v2038_v14 = vrot.slane %v2028_v62, 1  ;;  %v2039_v58 = vrot.slane %v2028_v62, 2  ;;  %v2040_v53 = vrot.slane %v2028_v62, 3 }
 0x470   :  { %4024 = vpow2.f32 %v2081_v52  ;;  %v2041_v55 = vrot.slane %v2028_v62, 4  ;;  %v2042_v6 = vrot.slane %v2028_v62, 5  ;;  %v2043_v57 = vrot.slane %v2028_v62, 6 }
 0x471   :  { %4026 = vpow2.f32 %v2083_v61  ;;  %v2069_v54 = vsub.f32 %v4720_v41, %v2028_v62  ;;  %v2070_v0 = vsub.f32 %v1962_v36, %v2038_v14  ;;  %v2044_v2 = vrot.slane %v2028_v62, 7 }
 0x472   :  { %v2071_v3 = vsub.f32 %v4716_v38, %v2039_v58  ;;  %v2072_v12 = vsub.f32 %v1964_v42, %v2040_v53  ;;  %v2073_v9 = vsub.f32 %v1965_v43, %v2041_v55  ;;  %4028 = vpow2.f32 %v2085_v11 }
 0x473   :  { %v2074_v23 = vsub.f32 %v1966_v47, %v2042_v6  ;;  %v2075_v4 = vsub.f32 %v1967_v46, %v2043_v57  ;;  %v2093_v39 = vmul.f32 1.442695, %v2069_v54  ;;  %v2095_v5 = vmul.f32 1.442695, %v2070_v0 }
 0x474   :  { %v2097_v8 = vmul.f32 1.442695, %v2071_v3  ;;  %v2099_v10 = vmul.f32 1.442695, %v2072_v12  ;;  %4030 = vpow2.f32 %v2087_v59  ;;  %v2101_v13 = vmul.f32 1.442695, %v2073_v9 }
 0x475   :  { %4032 = vpow2.f32 %v2093_v39  ;;  %v2068_v41 = vsub.f32 %v4701_v17, %v2037_v56  ;;  %v2076_v36 = vsub.f32 %v4728_v1, %v2044_v2  ;;  %v2103_v60 = vmul.f32 1.442695, %v2074_v23 }
 0x476   :  { %4034 = vpow2.f32 %v2095_v5  ;;  %v2105_v38 = vmul.f32 1.442695, %v2075_v4  ;;  %v2089_v43 = vmul.f32 1.442695, %v2067_v18 }
 0x477   :  { %4036 = vpow2.f32 %v2097_v8  ;;  %v2091_v46 = vmul.f32 1.442695, %v2068_v41  ;;  %v2107_v17 = vmul.f32 1.442695, %v2076_v36 }
 0x478   :  { %v4753_v42 = vpop.eup %4020  ;;  %4038 = vpow2.f32 %v2099_v10 }
 0x479   :  { %v4755_v47 = vpop.eup %4022  ;;  %4040 = vpow2.f32 %v2101_v13 }
 0x47a   :  { %v4757_v35 = vpop.eup %4024  ;;  %4042 = vpow2.f32 %v2103_v60  ;;  %v2125_v40 = vrot.slane %v4755_v47, 7 }
 0x47b   :  { %v4760_v45 = vpop.eup %4026  ;;  %4044 = vpow2.f32 %v2105_v38  ;;  %v2127_v1 = vrot.slane %v4757_v35, 6 }
 0x47c   :  { %4046 = vpow2.f32 %v2089_v43  ;;  %v2126_v49 = vsel %vm1986_vm1, %v2125_v40, %v4753_v42  ;;  %v4765_v51 = vpop.eup %4028  ;;  %v2129_v7 = vrot.slane %v4760_v45, 5 }
 0x47d   :  { %4048 = vpow2.f32 %v2091_v46  ;;  %v2128_v37 = vsel %vm1989_vm2, %v2127_v1, %v2126_v49  ;;  %v2131_v62 = vrot.slane %v4765_v51, 4  ;;  %v2246_v49 = vsel %vm2244_vm9, %v4507_v15, 0 }
 0x47e   :  { %v4768_v63 = vpop.eup %4030  ;;  %4050 = vpow2.f32 %v2107_v17  ;;  %v2130_v56 = vsel %vm1992_vm3, %v2129_v7, %v2128_v37  ;;  %v2292_v37 = vsel %vm2244_vm9, %v4522_v19, 0  ;;  %3633 = vmatpush3.bf16.msra.mxu0 %v2246_v49 }
 0x47f   :  { %v4771_v52 = vpop.eup %4032  ;;  %v2132_v55 = vsel %vm1995_vm4, %v2131_v62, %v2130_v56  ;;  %v2133_v0 = vrot.slane %v4768_v63, 3  ;;  %3639 = vmatpush3.bf16.msra.mxu1 %v2292_v37  ;;  %3644 = vmatprep.subr.bf16.mxu0 %v4310_v16  ;;  %v2614_v37 = vsel %vm2244_vm9, %v4554_v25, 0 }
 0x480   :  { %v4773_v61 = vpop.eup %4034  ;;  %3650 = vmatprep.subr.bf16.mxu1 %v4310_v16 }
 0x481   :  { %v4776_v11 = vpop.eup %4036  ;;  %v2139_v59 = vrot.slane %v4773_v61, 7  ;;  %v2134_v4 = vsel %vm1998_vm5, %v2133_v0, %v2132_v55 }
 0x482   :  { %v4780_v14 = vpop.eup %4038  ;;  %v2141_v58 = vrot.slane %v4776_v11, 6 }
 0x483   :  { %v4783_v53 = vpop.eup %4040  ;;  %v2140_v6 = vsel %vm1986_vm1, %v2139_v59, %v4771_v52  ;;  %v2143_v57 = vrot.slane %v4780_v14, 5 }
 0x484   :  { %v4789_v54 = vpop.eup %4042  ;;  %v2142_v18 = vsel %vm1989_vm2, %v2141_v58, %v2140_v6  ;;  %v2145_v2 = vrot.slane %v4783_v53, 4 }
 0x485   :  { %v4794_v3 = vpop.eup %4044  ;;  %v2144_v12 = vsel %vm1992_vm3, %v2143_v57, %v2142_v18  ;;  %v2147_v9 = vrot.slane %v4789_v54, 3  ;;  %v2338_v18 = vsel %vm2244_vm9, %v4529_v20, 0 }
 0x486   :  { %v4798_v23 = vpop.eup %4046  ;;  %v2146_v39 = vsel %vm1995_vm4, %v2145_v2, %v2144_v12  ;;  %v2149_v5 = vrot.slane %v4794_v3, 2 }
 0x487   :  { %v4803_v8 = vpop.eup %4048  ;;  %v2135_v10 = vrot.slane %v4798_v23, 2  ;;  %v2148_v13 = vsel %vm1998_vm5, %v2147_v9, %v2146_v39  ;;  %v2384_v9 = vsel %vm2244_vm9, %v4542_v24, 0 }
 0x488   :  { %v4807_v41 = vpop.eup %4050  ;;  %v2137_v36 = vrot.slane %v4803_v8, 1  ;;  %v2150_v60 = vsel %vm2001_vm6, %v2149_v5, %v2148_v13  ;;  %v2430_v5 = vsel %vm2244_vm9, %v4531_v21, 0 }
 0x489   :  { %v2136_v38 = vsel %vm2001_vm6, %v2135_v10, %v2134_v4  ;;  %v2151_v43 = vrot.slane %v4807_v41, 1 }
 0x48a   :  { %v2138_v46 = vsel %vm2004_vm7, %v2137_v36, %v2136_v38 }
 0x48b   :  { %v2155_v40 = vsel %vm2022_vm8, %v2138_v46, 0.0  ;;  %v2152_v17 = vsel %vm2004_vm7, %v2151_v43, %v2150_v60  ;;  %v2522_v43 = vsel %vm2244_vm9, %v4540_v22, 0 }
 0x48c   :  { %2156 = vadd.xlane.f32.xlu0 %v2155_v40  ;;  %v2158_v1 = vsel %vm2022_vm8, %v2152_v17, 0.0 }
 0x490   :  { %2159 = vadd.xlane.f32.xlu0 %v2158_v1 }
 0x519   :  { %v2157_v7 = vpop.xlane.xlu0 %2156 }
 0x51a   :  { %v2163_v56 = vrot.slane %v2157_v7, 1  ;;  %v2164_v62 = vrot.slane %v2157_v7, 2  ;;  %4052 = vrcp.f32 %v2157_v7  ;;  %v2165_v59 = vrot.slane %v2157_v7, 3 }
 0x51b   :  { %v2166_v58 = vrot.slane %v2157_v7, 4  ;;  %v2167_v55 = vrot.slane %v2157_v7, 5  ;;  %v2168_v39 = vrot.slane %v2157_v7, 6 }
 0x51c   :  { %4054 = vrcp.f32 %v2163_v56 }
 0x51d   :  { %4056 = vrcp.f32 %v2164_v62  ;;  %v4841_v13 = vpop.xlane.xlu0 %2159 }
 0x51e   :  { %4058 = vrcp.f32 %v2165_v59  ;;  %v2171_v1 = vrot.slane %v4841_v13, 2  ;;  %v2173_v59 = vrot.slane %v4841_v13, 4 }
 0x51f   :  { %4060 = vrcp.f32 %v2166_v58 }
 0x520   :  { %4062 = vrcp.f32 %v2167_v55  ;;  %v2706_v55 = vsel %vm2244_vm9, %v4568_v27, 0 }
 0x521   :  { %4064 = vrcp.f32 %v2168_v39 }
 0x524   :  { %v4053_v15 = vpop.eup %4052 }
 0x525   :  { %v2194_v19 = vmul.f32 %v4053_v15, %v4753_v42  ;;  %v2169_v42 = vrot.slane %v2157_v7, 7 }
 0x526   :  { %v4055_v6 = vpop.eup %4054 }
 0x527   :  { %v2196_v57 = vmul.f32 %v4055_v6, %v4755_v47  ;;  %v2225_v0 = vpack.c.bf16 %v2194_v19, %v2194_v19  ;;  %v4057_v2 = vpop.eup %4056  ;;  %4066 = vrcp.f32 %v2169_v42 }
 0x528   :  { %v4059_v4 = vpop.eup %4058  ;;  %v2198_v47 = vmul.f32 %v4057_v2, %v4757_v35  ;;  %v2476_v35 = vsel %vm2244_vm9, %v4556_v26, 0  ;;  %4068 = vrcp.f32 %v4841_v13 }
 0x529   :  { %v2226_v12 = vpack.c.bf16 %v2196_v57, %v2196_v57  ;;  %3635 = vmatmul.mubr.msk.bf16.vlgmr.msra.gmra.mrb[32].mxu0 %vm2022_vm8, %v2225_v0  ;;  %v2200_v20 = vmul.f32 %v4059_v4, %v4760_v45  ;;  %v4061_v10 = vpop.eup %4060  ;;  %v2170_v45 = vrot.slane %v4841_v13, 1  ;;  %v2175_v57 = vrot.slane %v4841_v13, 6 }
 0x52a   :  { %3645 = vmatpush3.bf16.msra.mxu0 %v2338_v18  ;;  %3646 = vmatprep.mubr.msk.bf16.mxu0 %vm4311_vm0, %v4310_v16  ;;  %v2227_v24 = vpack.c.bf16 %v2198_v47, %v2198_v47  ;;  %v4063_v60 = vpop.eup %4062  ;;  %v2202_v21 = vmul.f32 %v4061_v10, %v4765_v51  ;;  %v2568_v51 = vsel %vm2244_vm9, %v4570_v28, 0  ;;  %v2798_v18 = vsel %vm2244_vm9, %v4582_v29, 0  ;;  %v3943_v10 = vld [vmem:[#allocation12 + $0x8] sm:$0xff]  }
 0x52b   :  { %3641 = vmatmul.mubr.msk.bf16.vlgmr.msra.gmra.mrb[48].mxu1 %vm2022_vm8, %v2226_v12  ;;  %3656 = vmatprep.subr.bf16.mxu0 %v4310_v16  ;;  %v2228_v36 = vpack.c.bf16 %v2200_v20, %v2200_v20  ;;  %v2204_v26 = vmul.f32 %v4063_v60, %v4768_v63  ;;  %4070 = vrcp.f32 %v2170_v45  ;;  %v4065_v46 = vpop.eup %4064  ;;  %v2172_v63 = vrot.slane %v4841_v13, 3  ;;  %v3952_v60 = vld [vmem:[#allocation12 + $0x70] sm:$0xff]  }
 0x52c   :  { %3651 = vmatpush3.bf16.msra.mxu1 %v2384_v9  ;;  %3652 = vmatprep.mubr.msk.bf16.mxu1 %vm4311_vm0, %v4310_v16  ;;  %v2229_v38 = vpack.c.bf16 %v2202_v21, %v2202_v21  ;;  %v2206_v22 = vmul.f32 %v4065_v46, %v4798_v23  ;;  %4072 = vrcp.f32 %v2171_v1  ;;  %v2660_v23 = vsel %vm2244_vm9, %v4584_v30, 0  ;;  %v3953_v45 = vld [vmem:[#allocation12 + $0x30] sm:$0xff]   ;;  %v3954_v21 = vld [vmem:[#allocation12 + $0x78] sm:$0xff]  }
 0x52d   :  { %3662 = vmatprep.subr.bf16.mxu1 %v4310_v16  ;;  %v2230_v40 = vpack.c.bf16 %v2204_v26, %v2204_v26  ;;  %4074 = vrcp.f32 %v2172_v63  ;;  %v2890_v4 = vsel %vm2244_vm9, %v4596_v31, 0  ;;  %v2936_v47 = vsel %vm2244_vm9, %v4620_v34, 0  ;;  %v3940_v34 = vld [vmem:[#allocation12 + $0x40] sm:$0xff]   ;;  %v3955_v26 = vld [vmem:[#allocation12 + $0x38] sm:$0xff]  }
 0x52e   :  { %v2231_v49 = vpack.c.bf16 %v2206_v22, %v2206_v22  ;;  %4076 = vrcp.f32 %v2173_v59 }
 0x531   :  { %3647 = vmatmul.mubr.msk.bf16.vlgmr.msra.gmra.mrb[36].mxu0 %vm2022_vm8, %v2227_v24  ;;  %v4067_v17 = vpop.eup %4066 }
 0x532   :  { %3657 = vmatpush3.bf16.msra.mxu0 %v2430_v5  ;;  %3658 = vmatprep.mubr.msk.bf16.mxu0 %vm4311_vm0, %v4310_v16  ;;  %v2208_v28 = vmul.f32 %v4067_v17, %v4803_v8  ;;  %v4069_v7 = vpop.eup %4068  ;;  %v2174_v8 = vrot.slane %v4841_v13, 5  ;;  %v3941_v5 = vld [vmem:[#allocation12] sm:$0xff]  }
 0x533   :  { %3653 = vmatmul.mubr.msk.bf16.vlgmr.msra.gmra.mrb[52].mxu1 %vm2022_vm8, %v2228_v36  ;;  %3668 = vmatprep.subr.bf16.mxu0 %v4310_v16  ;;  %v2210_v25 = vmul.f32 %v4069_v7, %v4771_v52  ;;  %v2752_v52 = vsel %vm2244_vm9, %v4598_v32, 0  ;;  %v3947_v36 = vld [vmem:[#allocation12 + $0x18] sm:$0xff]  }
 0x534   :  { %3663 = vmatpush3.bf16.msra.mxu1 %v2476_v35  ;;  %3664 = vmatprep.mubr.msk.bf16.mxu1 %vm4311_vm0, %v4310_v16  ;;  %v2232_v56 = vpack.c.bf16 %v2208_v28, %v2208_v28  ;;  %4078 = vrcp.f32 %v2174_v8  ;;  %v3951_v35 = vld [vmem:[#allocation12 + $0x28] sm:$0xff]  }
 0x535   :  { %3674 = vmatprep.subr.bf16.mxu1 %v4310_v16  ;;  %v4071_v62 = vpop.eup %4070  ;;  %v2233_v58 = vpack.c.bf16 %v2210_v25, %v2210_v25  ;;  %4080 = vrcp.f32 %v2175_v57 }
 0x536   :  { %v2212_v30 = vmul.f32 %v4071_v62, %v4773_v61  ;;  %v4073_v15 = vpop.eup %4072  ;;  %v2176_v61 = vrot.slane %v4841_v13, 7  ;;  %v3946_v13 = vld [vmem:[#allocation12 + $0x58] sm:$0xff]  }
 0x537   :  { %v4075_v19 = vpop.eup %4074  ;;  %v2214_v27 = vmul.f32 %v4073_v15, %v4776_v11  ;;  %v2844_v11 = vsel %vm2244_vm9, %v4610_v33, 0 }
 0x538   :  { %v2234_v6 = vpack.c.bf16 %v2212_v30, %v2212_v30  ;;  %v2216_v32 = vmul.f32 %v4075_v19, %v4780_v14  ;;  %4082 = vrcp.f32 %v2176_v61  ;;  %v4077_v2 = vpop.eup %4076 }
 0x539   :  { %3659 = vmatmul.mubr.msk.bf16.vlgmr.msra.gmra.mrb[40].mxu0 %vm2022_vm8, %v2229_v38  ;;  %v2235_v0 = vpack.c.bf16 %v2214_v27, %v2214_v27  ;;  %v2218_v14 = vmul.f32 %v4077_v2, %v4783_v53 }
 0x53a   :  { %3669 = vmatpush3.bf16.msra.mxu0 %v2522_v43  ;;  %3670 = vmatprep.mubr.msk.bf16.mxu0 %vm4311_vm0, %v4310_v16  ;;  %v2236_v12 = vpack.c.bf16 %v2216_v32, %v2216_v32 }
 0x53b   :  { %3665 = vmatmul.mubr.msk.bf16.vlgmr.msra.gmra.mrb[56].mxu1 %vm2022_vm8, %v2230_v40  ;;  %3680 = vmatprep.subr.bf16.mxu0 %v4310_v16  ;;  %v2237_v33 = vpack.c.bf16 %v2218_v14, %v2218_v14 }
 0x53c   :  { %3675 = vmatpush3.bf16.msra.mxu1 %v2568_v51  ;;  %3676 = vmatprep.mubr.msk.bf16.mxu1 %vm4311_vm0, %v4310_v16 }
 0x53d   :  { %3686 = vmatprep.subr.bf16.mxu1 %v4310_v16 }
 0x53e   :  { %v4079_v9 = vpop.eup %4078 }
 0x53f   :  { %v2220_v29 = vmul.f32 %v4079_v9, %v4789_v54  ;;  %v4081_v39 = vpop.eup %4080 }
 0x540   :  { %v2222_v53 = vmul.f32 %v4081_v39, %v4794_v3  ;;  %v3942_v3 = vld [vmem:[#allocation12 + $0x48] sm:$0xff]  }
 0x541   :  { %3671 = vmatmul.mubr.msk.bf16.vlgmr.msra.gmra.mrb[44].mxu0 %vm2022_vm8, %v2231_v49  ;;  %v2238_v42 = vpack.c.bf16 %v2220_v29, %v2220_v29 }
 0x542   :  { %3681 = vmatpush3.bf16.msra.mxu0 %v2614_v37  ;;  %3682 = vmatprep.mubr.msk.bf16.mxu0 %vm4311_vm0, %v4310_v16  ;;  %v4083_v20 = vpop.eup %4082  ;;  %v2239_v54 = vpack.c.bf16 %v2222_v53, %v2222_v53 }
 0x543   :  { %3677 = vmatmul.mubr.msk.bf16.vlgmr.msra.gmra.mrb[60].mxu1 %vm2022_vm8, %v2232_v56  ;;  %3692 = vmatprep.subr.bf16.mxu0 %v4310_v16  ;;  %v2224_v31 = vmul.f32 %v4083_v20, %v4807_v41  ;;  %v3945_v41 = vld [vmem:[#allocation12 + $0x10] sm:$0xff]  }
 0x544   :  { %3687 = vmatpush3.bf16.msra.mxu1 %v2660_v23  ;;  %3688 = vmatprep.mubr.msk.bf16.mxu1 %vm4311_vm0, %v4310_v16 }
 0x545   :  { %3698 = vmatprep.subr.bf16.mxu1 %v4310_v16  ;;  %v2240_v24 = vpack.c.bf16 %v2224_v31, %v2224_v31 }
 0x549   :  { %3683 = vmatmul.mubr.msk.bf16.vlgmr.msra.gmra.mrb[48].mxu0 %vm2022_vm8, %v2233_v58 }
 0x54a   :  { %3693 = vmatpush3.bf16.msra.mxu0 %v2706_v55  ;;  %3694 = vmatprep.mubr.msk.bf16.mxu0 %vm4311_vm0, %v4310_v16 }
 0x54b   :  { %3689 = vmatmul.mubr.msk.bf16.vlgmr.msra.gmra.mrb[64].mxu1 %vm2022_vm8, %v2234_v6  ;;  %3704 = vmatprep.subr.bf16.mxu0 %v4310_v16 }
 0x54c   :  { %3699 = vmatpush3.bf16.msra.mxu1 %v2752_v52  ;;  %3700 = vmatprep.mubr.msk.bf16.mxu1 %vm4311_vm0, %v4310_v16 }
 0x54d   :  { %3710 = vmatprep.subr.bf16.mxu1 %v4310_v16 }
 0x551   :  { %3695 = vmatmul.mubr.msk.bf16.vlgmr.msra.gmra.mrb[52].mxu0 %vm2022_vm8, %v2235_v0 }
 0x552   :  { %3705 = vmatpush3.bf16.msra.mxu0 %v2798_v18  ;;  %3706 = vmatprep.mubr.msk.bf16.mxu0 %vm4311_vm0, %v4310_v16 }
 0x553   :  { %3701 = vmatmul.mubr.msk.bf16.vlgmr.msra.gmra.mrb[68].mxu1 %vm2022_vm8, %v2236_v12  ;;  %3716 = vmatprep.subr.bf16.mxu0 %v4310_v16 }
 0x554   :  { %3711 = vmatpush3.bf16.msra.mxu1 %v2844_v11  ;;  %3712 = vmatprep.mubr.msk.bf16.mxu1 %vm4311_vm0, %v4310_v16 }
 0x555   :  { %3722 = vmatprep.subr.bf16.mxu1 %v4310_v16 }
 0x559   :  { %3707 = vmatmul.mubr.msk.bf16.vlgmr.msra.gmra.mrb[56].mxu0 %vm2022_vm8, %v2237_v33 }
 0x55a   :  { %3717 = vmatpush3.bf16.msra.mxu0 %v2890_v4  ;;  %3718 = vmatprep.mubr.msk.bf16.mxu0 %vm4311_vm0, %v4310_v16 }
 0x55b   :  { %3713 = vmatmul.mubr.msk.bf16.vlgmr.msra.gmra.mrb[72].mxu1 %vm2022_vm8, %v2238_v42  ;;  %3514 = vmatprep.subr.bf16.mxu0 %v3940_v34 }
 0x55c   :  { %3723 = vmatpush3.bf16.msra.mxu1 %v2936_v47  ;;  %3724 = vmatprep.mubr.msk.bf16.mxu1 %vm4311_vm0, %v4310_v16  ;;  %v3944_v16 = vld [vmem:[#allocation12 + $0x50] sm:$0xff]  }
 0x561   :  { %3719 = vmatmul.mubr.msk.bf16.vlgmr.msra.gmra.mrb[60].mxu0 %vm2022_vm8, %v2239_v54 }
 0x562   :  { %3193 = vmatprep.mubr.bf16.mxu0 %v3025_v50  ;;  %3515 = vmatpush3.bf16.msra.mxu0 %v3941_v5  ;;  %v3950_v50 = vld [vmem:[#allocation12 + $0x68] sm:$0xff]  }
 0x563   :  { %3725 = vmatmul.mubr.msk.bf16.vlgmr.msra.gmra.mrb[76].mxu1 %vm2022_vm8, %v2240_v24  ;;  %3516 = vmatprep.subr.bf16.mxu0 %v3942_v3 }
 0x566   :  { %3517 = vmatpush3.bf16.msra.mxu0 %v3943_v10 }
 0x567   :  { %3518 = vmatprep.subr.bf16.mxu0 %v3944_v16 }
 0x56a   :  { %3519 = vmatpush3.bf16.msra.mxu0 %v3945_v41 }
 0x56b   :  { %3520 = vmatprep.subr.bf16.mxu0 %v3946_v13 }
 0x56e   :  { %3521 = vmatpush3.bf16.msra.mxu0 %v3947_v36 }
 0x56f   :  { %3522 = vmatprep.subr.bf16.mxu0 %v3948_v44 }
 0x572   :  { %3523 = vmatpush3.bf16.msra.mxu0 %v3949_v48 }
 0x573   :  { %3524 = vmatprep.subr.bf16.mxu0 %v3950_v50 }
 0x576   :  { %3525 = vmatpush3.bf16.msra.mxu0 %v3951_v35 }
 0x577   :  { %3526 = vmatprep.subr.bf16.mxu0 %v3952_v60 }
 0x57a   :  { %3527 = vmatpush3.bf16.msra.mxu0 %v3953_v45 }
 0x57b   :  { %3528 = vmatprep.subr.bf16.mxu0 %v3954_v21 }
 0x57e   :  { %3529 = vmatpush3.bf16.msra.mxu0 %v3955_v26 }
 0x5fc   :  { %v2282_v38 = vpop.f32.mrb[32].mxu0 }
 0x5fd   :  { %v3636_v43 = vpop.f32.mrb[33].mxu0 }
 0x5fe   :  { %v2328_v46 = vpop.f32.mrb[48].mxu1  ;;  %v2285_v40 = vpop.f32.mrb[34].mxu0 }
 0x5ff   :  { %v2994_v51 = vrot.slane %v2328_v46, 7  ;;  %v3642_v17 = vpop.f32.mrb[49].mxu1  ;;  %v3637_v1 = vpop.f32.mrb[35].mxu0 }
 0x600   :  { %v2331_v63 = vpop.f32.mrb[50].mxu1 }
 0x601   :  { %v2995_v22 = vsel %vm1986_vm1, %v2994_v51, %v2282_v38  ;;  %v3643_v28 = vpop.f32.mrb[51].mxu1 }
 0x604   :  { %v2374_v49 = vpop.f32.mrb[36].mxu0 }
 0x605   :  { %v2996_v37 = vrot.slane %v2374_v49, 6  ;;  %v3648_v7 = vpop.f32.mrb[37].mxu0 }
 0x606   :  { %v2420_v56 = vpop.f32.mrb[52].mxu1  ;;  %v2377_v23 = vpop.f32.mrb[38].mxu0 }
 0x607   :  { %v2998_v62 = vrot.slane %v2420_v56, 5  ;;  %v3654_v59 = vpop.f32.mrb[53].mxu1  ;;  %v2997_v8 = vsel %vm1989_vm2, %v2996_v37, %v2995_v22  ;;  %v3649_v25 = vpop.f32.mrb[39].mxu0 }
 0x608   :  { %v2423_v30 = vpop.f32.mrb[54].mxu1 }
 0x609   :  { %v2999_v58 = vsel %vm1992_vm3, %v2998_v62, %v2997_v8  ;;  %v3655_v55 = vpop.f32.mrb[55].mxu1 }
 0x60c   :  { %v2466_v15 = vpop.f32.mrb[40].mxu0 }
 0x60d   :  { %v3000_v6 = vrot.slane %v2466_v15, 4  ;;  %v3660_v52 = vpop.f32.mrb[41].mxu0 }
 0x60e   :  { %v2512_v19 = vpop.f32.mrb[56].mxu1  ;;  %v2469_v57 = vpop.f32.mrb[42].mxu0 }
 0x60f   :  { %v3002_v61 = vrot.slane %v2512_v19, 3  ;;  %v3666_v27 = vpop.f32.mrb[57].mxu1  ;;  %v3001_v32 = vsel %vm1995_vm4, %v3000_v6, %v2999_v58  ;;  %v3661_v0 = vpop.f32.mrb[43].mxu0 }
 0x610   :  { %v2515_v18 = vpop.f32.mrb[58].mxu1 }
 0x611   :  { %v3003_v2 = vsel %vm1998_vm5, %v3002_v61, %v3001_v32  ;;  %v3667_v12 = vpop.f32.mrb[59].mxu1 }
 0x614   :  { %v2558_v11 = vpop.f32.mrb[44].mxu0 }
 0x615   :  { %v3004_v9 = vrot.slane %v2558_v11, 2  ;;  %v3672_v14 = vpop.f32.mrb[45].mxu0 }
 0x616   :  { %v2604_v29 = vpop.f32.mrb[60].mxu1  ;;  %v2561_v33 = vpop.f32.mrb[46].mxu0 }
 0x617   :  { %v3006_v4 = vrot.slane %v2604_v29, 1  ;;  %v3678_v39 = vpop.f32.mrb[61].mxu1  ;;  %v3005_v42 = vsel %vm2001_vm6, %v3004_v9, %v3003_v2  ;;  %v3673_v47 = vpop.f32.mrb[47].mxu0 }
 0x618   :  { %v2607_v20 = vpop.f32.mrb[62].mxu1 }
 0x619   :  { %v3007_v53 = vsel %vm2004_vm7, %v3006_v4, %v3005_v42  ;;  %v3679_v31 = vpop.f32.mrb[63].mxu1 }
 0x61c   :  { %v2650_v54 = vpop.f32.mrb[48].mxu0 }
 0x61d   :  { %v3684_v24 = vpop.f32.mrb[49].mxu0 }
 0x61e   :  { %v2696_v34 = vpop.f32.mrb[64].mxu1  ;;  %v2653_v5 = vpop.f32.mrb[50].mxu0 }
 0x61f   :  { %v3008_v3 = vrot.slane %v2696_v34, 7  ;;  %v3690_v10 = vpop.f32.mrb[65].mxu1  ;;  %v3685_v16 = vpop.f32.mrb[51].mxu0 }
 0x620   :  { %v2699_v41 = vpop.f32.mrb[66].mxu1 }
 0x621   :  { %v3009_v13 = vsel %vm1986_vm1, %v3008_v3, %v2650_v54  ;;  %v3691_v36 = vpop.f32.mrb[67].mxu1 }
 0x624   :  { %v2742_v44 = vpop.f32.mrb[52].mxu0 }
 0x625   :  { %v3010_v48 = vrot.slane %v2742_v44, 6  ;;  %v3696_v50 = vpop.f32.mrb[53].mxu0 }
 0x626   :  { %v2788_v35 = vpop.f32.mrb[68].mxu1  ;;  %v2745_v60 = vpop.f32.mrb[54].mxu0 }
 0x627   :  { %v3012_v45 = vrot.slane %v2788_v35, 5  ;;  %v3702_v21 = vpop.f32.mrb[69].mxu1  ;;  %v3011_v26 = vsel %vm1989_vm2, %v3010_v48, %v3009_v13  ;;  %v3697_v38 = vpop.f32.mrb[55].mxu0 }
 0x628   :  { %v2791_v43 = vpop.f32.mrb[70].mxu1 }
 0x629   :  { %v3013_v46 = vsel %vm1992_vm3, %v3012_v45, %v3011_v26  ;;  %v3703_v40 = vpop.f32.mrb[71].mxu1 }
 0x62c   :  { %v2834_v51 = vpop.f32.mrb[56].mxu0 }
 0x62d   :  { %v3014_v17 = vrot.slane %v2834_v51, 4  ;;  %v3708_v1 = vpop.f32.mrb[57].mxu0 }
 0x62e   :  { %v2880_v63 = vpop.f32.mrb[72].mxu1  ;;  %v2837_v22 = vpop.f32.mrb[58].mxu0 }
 0x62f   :  { %v3016_v28 = vrot.slane %v2880_v63, 3  ;;  %v3714_v49 = vpop.f32.mrb[73].mxu1  ;;  %v3015_v37 = vsel %vm1995_vm4, %v3014_v17, %v3013_v46  ;;  %v3709_v7 = vpop.f32.mrb[59].mxu0 }
 0x630   :  { %v2883_v56 = vpop.f32.mrb[74].mxu1 }
 0x631   :  { %v3017_v23 = vsel %vm1998_vm5, %v3016_v28, %v3015_v37  ;;  %v3715_v62 = vpop.f32.mrb[75].mxu1 }
 0x634   :  { %v2926_v59 = vpop.f32.mrb[60].mxu0 }
 0x635   :  { %v3018_v8 = vrot.slane %v2926_v59, 2  ;;  %v3720_v25 = vpop.f32.mrb[61].mxu0 }
 0x636   :  { %v2972_v30 = vpop.f32.mrb[76].mxu1  ;;  %v2929_v58 = vpop.f32.mrb[62].mxu0 }
 0x637   :  { %v3020_v55 = vrot.slane %v2972_v30, 1  ;;  %v3726_v15 = vpop.f32.mrb[77].mxu1  ;;  %v3019_v6 = vsel %vm2001_vm6, %v3018_v8, %v3017_v23  ;;  %v3721_v52 = vpop.f32.mrb[63].mxu0 }
 0x638   :  { %v2975_v19 = vpop.f32.mrb[78].mxu1 }
 0x639   :  { %v3021_v57 = vsel %vm2004_vm7, %v3020_v55, %v3019_v6  ;;  %v3727_v61 = vpop.f32.mrb[79].mxu1 }
 0x63a   :  { %v3024_v27 = vpack.c.bf16 %v3021_v57, %v3007_v53 }
 0x63c   :  { %3194 = vmatmul.mubr.bf16.vlgmr.msra.gmra.mrb[64].mxu0 %v3024_v27 }
 0x63d   :  { %4231 = shalt.err (!%p4228_p10)
}
 0x63e   :  { %s4232_s0 = scalar_lea.hbm %s5010_s12, 512 }
 0x63f   :  { %p4233_p11 = scmp.ne.s32.totalorder %s5010_s12, %s4232_s0  ;;  %p4236_p12 = scmp.lt.u32.totalorder %s4232_s0, %s5010_s12 }
 0x641   :  { %p4238_p13 = pnand %p4236_p12, %p4233_p11 }
 0x643   :  { %4241 = shalt.err (!%p4238_p13)
}
 0x644   :  { %3237 = dma.vmem_to_hbm [thread:$0]  %s3232_s25, 512, %s5010_s12, [#allocation16], %s4300_s21, %s4300_s21, %s4301_s22  }
 0x645   :  { %s4314_s8 = smov [#allocation17]  }
 0x646   :  { %s3243_s4 = sshll.u32 %s4314_s8, 4  ;;  %s3244_s4 = int_to_ptr.vmem [resolvable:$true] %s3243_s4 }
 0x647   :  { %s4242_s15 = scalar_lea.vmem %s3244_s4, 512  ;;  %p4247_p1 = scmp.lt.s32.totalorder %s3244_s4, %s3244_s4 }
 0x648   :  { %p4243_p0 = scmp.ne.s32.totalorder %s3244_s4, %s4242_s15  ;;  %p4248_p2 = scmp.lt.s32.totalorder %s4242_s15, %s4242_s15 }
 0x64a   :  { %p4249_p3 = por %p4248_p2, %p4247_p1 }
 0x64c   :  { %p4250_p4 = pnand %p4249_p3, %p4243_p0 }
 0x64e   :  { %4253 = shalt.err (!%p4250_p4)
}
 0x64f   :  { %s4254_s19 = scalar_lea.hbm %s5011_s13, 512 }
 0x650   :  { %p4255_p5 = scmp.ne.s32.totalorder %s5011_s13, %s4254_s19  ;;  %p4258_p6 = scmp.lt.u32.totalorder %s4254_s19, %s5011_s13 }
 0x652   :  { %p4260_p7 = pnand %p4258_p6, %p4255_p5 }
 0x654   :  { %4263 = shalt.err (!%p4260_p7)
}
 0x655   :  { %3249 = dma.vmem_to_hbm [thread:$0]  %s3244_s4, 512, %s5011_s13, [#allocation16], %s4300_s21, %s4300_s21, %s4301_s22  }
 0x656   :  { %v3424_v0 = vld [vmem:[%s5008_s10] ss:$0 sm:$0xff]  ;;  %s4315_s26 = smov [#allocation14]  }
 0x657   :  { %s3219_s27 = sshll.u32 %s4315_s26, 4  ;;  %s3220_s27 = int_to_ptr.vmem [resolvable:$true] %s3219_s27 }
 0x658   :  { %s4264_s13 = scalar_lea.vmem %s3220_s27, 128  ;;  %p4269_p9 = scmp.lt.s32.totalorder %s3220_s27, %s3220_s27 }
 0x659   :  { %p4265_p8 = scmp.ne.s32.totalorder %s3220_s27, %s4264_s13  ;;  %p4270_p10 = scmp.lt.s32.totalorder %s4264_s13, %s4264_s13 }
 0x65b   :  { %p4271_p11 = por %p4270_p10, %p4269_p9 }
 0x65d   :  { %p4272_p12 = pnand %p4271_p11, %p4265_p8 }
 0x70f   :  { %v3530_v32 = vpop.f32.mrb[64].mxu0 }
 0x710   :  { %v3531_v18 = vpop.f32.mrb[65].mxu0 }
 0x711   :  { %v3532_v2 = vadd.f32 %v3531_v18, %v3530_v32  ;;  %v3533_v12 = vpop.f32.mrb[66].mxu0 }
 0x712   :  { %v3534_v11 = vpop.f32.mrb[67].mxu0 }
 0x713   :  { %v3196_v9 = vadd.f32 %v3532_v2, %v3424_v0  ;;  %v3535_v14 = vadd.f32 %v3534_v11, %v3533_v12 }
 0x715   :  { %v3199_v29 = vadd.f32 %v3535_v14, %v3424_v0  ;;  %4084 = vtanh.f32 %v3196_v9 }
 0x717   :  { %4086 = vtanh.f32 %v3199_v29 }
 0x71f   :  { %v4085_v33 = vpop.eup %4084 }
 0x721   :  { %v4087_v4 = vpop.eup %4086 }
 0x722   :  { %v3448_v39 = vpack.c.bf16 %v4087_v4, %v4085_v33 }
 0x724   :  { %3449 = vst [vmem:[#allocation14] sm:$0xff] %v3448_v39  }
 0x725   :  { %4275 = shalt.err (!%p4272_p12)
}
 0x726   :  { %s4276_s22 = scalar_lea.hbm %s5009_s11, 128 }
 0x727   :  { %p4277_p13 = scmp.ne.s32.totalorder %s5009_s11, %s4276_s22  ;;  %p4280_p0 = scmp.lt.u32.totalorder %s4276_s22, %s5009_s11 }
 0x729   :  { %p4282_p1 = pnand %p4280_p0, %p4277_p13 }
 0x72b   :  { %4285 = shalt.err (!%p4282_p1)
}
 0x72c   :  { %3225 = dma.vmem_to_hbm [thread:$0]  %s3220_s27, 128, %s5009_s11, [#allocation5], %s4302_s1, %s4302_s1, %s4303_s28  }
 0x72d   :  { %4294 = dma.done.wait [#allocation5], 128  }
 0x72e   :  { %4295 = vsyncadd [#allocation5], 4294967168 }
 0x72f   :  { %4296 = dma.done.wait [#allocation16], 1024  }
 0x730   :  { %4297 = vsyncadd [#allocation16], 4294966272 }
 0x731   :  { %3259 = vsyncpa [#allocation4], 1 }
 0x732   :  { %3260 = vsyncpa [#allocation7], 1 }
 0x733   :  { %3261 = vsyncpa [#allocation10], 1 }
 0x734   :  { %3262 = vsyncpa [#allocation13], 1 }
 0x735   :  { %3263 = vsyncpa [#allocation5], 1 }
 0x736   :  { %3264 = vsyncpa [#allocation16], 1 }

</bundles_post_ra>
